<compile_context>
chip_gen: v7x
topology: tpu7x:2x2x1
jax: 0.10.0
libtpu: 0.0.40
codegen_flags: <defaults>
</compile_context>

<pallas_src>
import functools

import jax
import jax.numpy as jnp
import numpy as np
from jax.experimental import pallas as pl
from jax.experimental.pallas import tpu as pltpu


# ----------------------------------------------------------------------------
# Shared per-head math (used verbatim by the Pallas kernel and the reference,
# so both paths have identical cast points / accumulation semantics).
# ----------------------------------------------------------------------------
def _head_forward_math(x, w1c, b1c, w2c, b2c, wfc, bfc, w1, b1, w2, b2,
                       wva, bva, *, n_batch, s2, kk2, n_actions):
    """x: (kk2*s2*n_batch, C*k1*k1) bf16 patch matrix, rows ordered (p, s, n).

    Returns Q of shape (n_batch, n_actions) in float32.
    """
    f32 = jnp.float32
    cdt = x.dtype                      # compute dtype for matmul operands (bf16)
    m2 = s2 * n_batch                  # rows per conv2-kernel-position block

    def dense(inp, w, b, relu=True):
        y = jnp.dot(inp, w, preferred_element_type=f32) + b
        return jnp.maximum(y, 0.0) if relu else y

    # conv1 applied to the conv2-expanded patch matrix  -> (kk2*m2, 16)
    c1 = dense(x, w1c, b1c).astype(cdt)

    # conv2: sum over the kk2 kernel positions; each position's rows are a
    # contiguous block of c1 (static slices only, no in-kernel im2col).
    c2 = b2c                                                   # (1, 32) f32
    for p in range(kk2):
        c2 = c2 + jnp.dot(c1[p * m2:(p + 1) * m2, :],
                          w2c[p * 16:(p + 1) * 16, :],
                          preferred_element_type=f32)
    c2 = jnp.maximum(c2, 0.0).astype(cdt)                      # (m2, 32), rows (s, n)

    # fc: "flatten" the conv2 output by summing per-spatial-position matmuls
    # (rows for spatial position s are the contiguous block [s*N, (s+1)*N)).
    st = bfc                                                   # (1, latent) f32
    for s in range(s2):
        st = st + jnp.dot(c2[s * n_batch:(s + 1) * n_batch, :],
                          wfc[s * 32:(s + 1) * 32, :],
                          preferred_element_type=f32)
    state = jnp.maximum(st, 0.0).astype(cdt)                   # (N, latent)

    # multi-head dueling MLP (V and A fused into one projection: cols [V | A])
    h1 = dense(state, w1, b1).astype(cdt)
    h2 = dense(h1, w2, b2).astype(cdt)
    va = dense(h2, wva, bva, relu=False)                       # (N, 1 + nA) f32
    v = va[:, :1]
    a = va[:, 1:1 + n_actions]
    return v + a - jnp.mean(a, axis=-1, keepdims=True)


# ----------------------------------------------------------------------------
# Pallas kernel: one grid step == one head, everything fused.
# ----------------------------------------------------------------------------
def _fused_head_kernel(p2g_ref, w1c_ref, b1c_ref, w2c_ref, b2c_ref,
                       wfc_ref, bfc_ref, w1_ref, b1_ref, w2_ref, b2_ref,
                       wva_ref, bva_ref, q_ref,
                       *, n_batch, s2, kk2, n_actions):
    q = _head_forward_math(
        p2g_ref[...],
        w1c_ref[0], b1c_ref[0], w2c_ref[0], b2c_ref[0],
        wfc_ref[0], bfc_ref[0],
        w1_ref[0], b1_ref[0], w2_ref[0], b2_ref[0],
        wva_ref[0], bva_ref[0],
        n_batch=n_batch, s2=s2, kk2=kk2, n_actions=n_actions)
    q_ref[0] = q.astype(q_ref.dtype)


def fused_multihead_q(p2g, params, *, n_batch, s2, kk2, n_actions):
    """Q for all heads in one pallas_call.  p2g: (kk2*s2*N, C*k1*k1) bf16."""
    total_heads = params["w1c"].shape[0]
    rows, k1 = p2g.shape
    latent = params["wfc"].shape[2]
    hid = params["w1"].shape[2]

    kernel = functools.partial(_fused_head_kernel, n_batch=n_batch, s2=s2,
                               kk2=kk2, n_actions=n_actions)
    head_map = lambda h: (h, 0, 0)

    # Per-head weight working set ~0.2 MB bf16 (double buffered ~0.4 MB): far
    # below the scoped VMEM limit on v5e/v6e/v7x.
    # TODO(synk): for large batch, add a second grid axis tiling the batch so
    # the shared patch matrix stays bounded in VMEM (weights indexed by h only).
    return pl.pallas_call(
        kernel,
        out_shape=jax.ShapeDtypeStruct((total_heads, n_batch, n_actions),
                                       jnp.float32),
        grid=(total_heads,),
        in_specs=[
            pl.BlockSpec((rows, k1), lambda h: (0, 0)),          # shared patches
            pl.BlockSpec((1, k1, 16), head_map),                 # conv1 W
            pl.BlockSpec((1, 1, 16), head_map),                  # conv1 b
            pl.BlockSpec((1, kk2 * 16, 32), head_map),           # conv2 W
            pl.BlockSpec((1, 1, 32), head_map),                  # conv2 b
            pl.BlockSpec((1, s2 * 32, latent), head_map),        # fc W
            pl.BlockSpec((1, 1, latent), head_map),              # fc b
            pl.BlockSpec((1, latent, hid), head_map),            # l1 W
            pl.BlockSpec((1, 1, hid), head_map),                 # l1 b
            pl.BlockSpec((1, hid, hid), head_map),               # l2 W
            pl.BlockSpec((1, 1, hid), head_map),                 # l2 b
            pl.BlockSpec((1, hid, 1 + n_actions), head_map),     # [V|A] W
            pl.BlockSpec((1, 1, 1 + n_actions), head_map),       # [V|A] b
        ],
        out_specs=pl.BlockSpec((1, n_batch, n_actions), head_map),
        compiler_params=pltpu.CompilerParams(
            dimension_semantics=("parallel",)),
    )(p2g, params["w1c"], params["b1c"], params["w2c"], params["b2c"],
      params["wfc"], params["bfc"], params["w1"], params["b1"],
      params["w2"], params["b2"], params["wva"], params["bva"])


# ----------------------------------------------------------------------------
# Plain-JAX glue: im2col of the pixels + the conv1->conv2 combined row gather
# (data- and head-independent, computed once per forward).
# ----------------------------------------------------------------------------
def im2col_nchw(x, k, stride):
    """x: (..., C, H, W) -> (..., OH*OW, C*k*k), cols in (C, kh, kw) order."""
    *lead, C, H, W = x.shape
    OH = (H - k) // stride + 1
    OW = (W - k) // stride + 1
    cols = []
    for i in range(k):
        for j in range(k):
            cols.append(x[..., :, i:i + stride * OH:stride, j:j + stride * OW:stride])
    p = jnp.stack(cols, axis=-3)                       # (..., C, k*k, OH, OW)
    p = p.reshape(*lead, C * k * k, OH, OW)
    p = jnp.moveaxis(p, -3, -1)                        # (..., OH, OW, C*k*k)
    return p.reshape(*lead, OH * OW, C * k * k), OH, OW


def _conv2_gather_indices(N, OH1, OW1, OH2, OW2, k, stride):
    """Row indices into the conv1 patch matrix, ordered (p=(i,j), s=(oh,ow), n)."""
    idx = np.empty((k * k, OH2 * OW2, N), dtype=np.int32)
    for i in range(k):
        for j in range(k):
            p = i * k + j
            for oh in range(OH2):
                for ow in range(OW2):
                    s = oh * OW2 + ow
                    r1 = (stride * oh + i) * OW1 + (stride * ow + j)
                    idx[p, s, :] = np.arange(N, dtype=np.int32) * (OH1 * OW1) + r1
    return jnp.asarray(idx.reshape(-1))


# ----------------------------------------------------------------------------
# Reference path (same math, no Pallas) for correctness checking.
# ----------------------------------------------------------------------------
def ref_forward_heads(p2g, params, *, n_batch, s2, kk2, n_actions):
    total_heads = params["w1c"].shape[0]
    outs = []
    for h in range(total_heads):
        outs.append(_head_forward_math(
            p2g,
            params["w1c"][h], params["b1c"][h], params["w2c"][h], params["b2c"][h],
            params["wfc"][h], params["bfc"][h],
            params["w1"][h], params["b1"][h], params["w2"][h], params["b2"][h],
            params["wva"][h], params["bva"][h],
            n_batch=n_batch, s2=s2, kk2=kk2, n_actions=n_actions))
    return jnp.stack(outs, axis=0).astype(jnp.float32)


# ----------------------------------------------------------------------------
# Parameter construction (PyTorch layouts, then packed for the kernel).
# ----------------------------------------------------------------------------
def make_params(key, *, total_heads, latent_dim, n_actions, input_channels,
                height, width, hidden_dim=256):
    ks = jax.random.split(key, 12)
    Hh, C = total_heads, input_channels
    OH1 = (height - 8) // 4 + 1
    OW1 = (width - 8) // 4 + 1
    OH2 = (OH1 - 4) // 2 + 1
    OW2 = (OW1 - 4) // 2 + 1
    S2 = OH2 * OW2
    F = 32 * S2

    s = 0.05
    # PyTorch-layout weights.
    conv1_w = s * jax.random.normal(ks[0], (Hh, 16, C, 8, 8), jnp.float32)   # (oc,cin,kh,kw)
    conv1_b = s * jax.random.normal(ks[1], (Hh, 16), jnp.float32)
    conv2_w = s * jax.random.normal(ks[2], (Hh, 32, 16, 4, 4), jnp.float32)
    conv2_b = s * jax.random.normal(ks[3], (Hh, 32), jnp.float32)
    fc_w = s * jax.random.normal(ks[4], (Hh, latent_dim, F), jnp.float32)    # in = (c,oh,ow)
    fc_b = s * jax.random.normal(ks[5], (Hh, latent_dim), jnp.float32)
    l1_w = s * jax.random.normal(ks[6], (Hh, hidden_dim, latent_dim), jnp.float32)
    l1_b = s * jax.random.normal(ks[7], (Hh, hidden_dim), jnp.float32)
    l2_w = s * jax.random.normal(ks[8], (Hh, hidden_dim, hidden_dim), jnp.float32)
    l2_b = s * jax.random.normal(ks[9], (Hh, hidden_dim), jnp.float32)
    lV_w = 0.01 * jax.random.normal(ks[10], (Hh, 1, hidden_dim), jnp.float32)
    lA_w = 0.01 * jax.random.normal(ks[11], (Hh, n_actions, hidden_dim), jnp.float32)
    # NOTE: PyTorch biases are uniform-initialized; values are irrelevant for
    # the kernel check.  lV/lA biases are zeroed exactly as in the module.

    bf16 = jnp.bfloat16
    # conv2 weight with input columns reordered to (kh, kw, cin).
    w2c = jnp.transpose(conv2_w, (0, 3, 4, 2, 1)).reshape(Hh, 16 * 16, 32)
    # fc weight with input rows reordered to (oh, ow, c) [= kernel flatten order].
    wfc = fc_w.reshape(Hh, latent_dim, 32, OH2, OW2)
    wfc = jnp.transpose(wfc, (0, 3, 4, 2, 1)).reshape(Hh, S2 * 32, latent_dim)
    # fused value/advantage projection: output columns are [V, A_0..A_{nA-1}].
    wva = jnp.concatenate([lV_w, lA_w], axis=1)                # (Hh, 1+nA, hid)

    return {
        "w1c": conv1_w.reshape(Hh, 16, C * 64).transpose(0, 2, 1).astype(bf16),
        "b1c": conv1_b.reshape(Hh, 1, 16),
        "w2c": w2c.astype(bf16),
        "b2c": conv2_b.reshape(Hh, 1, 32),
        "wfc": wfc.astype(bf16),
        "bfc": fc_b.reshape(Hh, 1, latent_dim),
        "w1": l1_w.transpose(0, 2, 1).astype(bf16),
        "b1": l1_b.reshape(Hh, 1, hidden_dim),
        "w2": l2_w.transpose(0, 2, 1).astype(bf16),
        "b2": l2_b.reshape(Hh, 1, hidden_dim),
        "wva": jnp.transpose(wva, (0, 2, 1)).astype(bf16),     # (Hh, hid, 1+nA)
        "bva": jnp.zeros((Hh, 1, 1 + n_actions), jnp.float32),
    }


# ----------------------------------------------------------------------------
# Forward pass
# ----------------------------------------------------------------------------
def forward(params, pixels, *, n_heads, total_heads, use_pallas=True):
    N, C, H, W = pixels.shape
    n_actions = params["wva"].shape[2] - 1
    OH2 = (((H - 8) // 4 + 1) - 4) // 2 + 1
    OW2 = (((W - 8) // 4 + 1) - 4) // 2 + 1
    S2, KK2 = OH2 * OW2, 16

    # conv1 im2col (head-independent, done once).
    p1, OH1, OW1 = im2col_nchw(pixels, 8, 4)                 # (N, OH1*OW1, C*64)
    p1 = p1.reshape(N * OH1 * OW1, C * 64)

    # Fold conv2's im2col into a data-independent row gather so the whole
    # per-head pipeline runs inside one pallas_call (no HBM round trip for the
    # per-head conv1 activations).  Row order is (kernel-pos, spatial, batch).
    idx = _conv2_gather_indices(N, OH1, OW1, OH2, OW2, 4, 2)
    p2g = p1[idx].astype(jnp.bfloat16)                        # (KK2*S2*N, C*64)

    fn = fused_multihead_q if use_pallas else ref_forward_heads
    q = fn(p2g, params, n_batch=N, s2=S2, kk2=KK2, n_actions=n_actions)

    q = jnp.transpose(q, (1, 0, 2))                           # (N, Hh, nA)
    return q.reshape(N, -1, n_heads, n_actions)


# ----------------------------------------------------------------------------
if __name__ == "__main__":
    batch = 2
    input_channels = 1
    height = width = 42
    latent_dim = 32
    n_actions = 4
    n_heads = 2
    int_heads = True
    total_heads = n_heads * (2 if int_heads else 1)   # = 4

    key = jax.random.PRNGKey(0)
    kp, kx = jax.random.split(key)
    params = make_params(kp, total_heads=total_heads, latent_dim=latent_dim,
                         n_actions=n_actions, input_channels=input_channels,
                         height=height, width=width)
    pixels = jax.random.normal(kx, (batch, input_channels, height, width),
                               jnp.float32)

    fwd = jax.jit(functools.partial(forward, n_heads=n_heads,
                                    total_heads=total_heads, use_pallas=True))
    q = jax.block_until_ready(fwd(params, pixels))

    q_ref = jax.block_until_ready(
        forward(params, pixels, n_heads=n_heads, total_heads=total_heads,
                use_pallas=False))

    assert q.shape == (batch, total_heads // n_heads, n_heads, n_actions), q.shape
    assert np.all(np.isfinite(np.asarray(q)))
    # Both paths use identical bf16 operands / cast points and f32 accumulation,
    # so they agree closely; tolerance only covers accumulation-order jitter.
    np.testing.assert_allclose(np.asarray(q), np.asarray(q_ref),
                               rtol=1e-2, atol=1e-3)

    print("KERNEL_OK")
</pallas_src>

<mosaic_0001>
module attributes {stable_mosaic.version = 11 : i64} {
  func.func @_fused_head_kernel(%arg0: i32, %arg1: memref<288x64xbf16, #tpu.memory_space<vmem>>, %arg2: memref<1x64x16xbf16, #tpu.memory_space<vmem>>, %arg3: memref<1x1x16xf32, #tpu.memory_space<vmem>>, %arg4: memref<1x256x32xbf16, #tpu.memory_space<vmem>>, %arg5: memref<1x1x32xf32, #tpu.memory_space<vmem>>, %arg6: memref<1x288x32xbf16, #tpu.memory_space<vmem>>, %arg7: memref<1x1x32xf32, #tpu.memory_space<vmem>>, %arg8: memref<1x32x256xbf16, #tpu.memory_space<vmem>>, %arg9: memref<1x1x256xf32, #tpu.memory_space<vmem>>, %arg10: memref<1x256x256xbf16, #tpu.memory_space<vmem>>, %arg11: memref<1x1x256xf32, #tpu.memory_space<vmem>>, %arg12: memref<1x256x5xbf16, #tpu.memory_space<vmem>>, %arg13: memref<1x1x5xf32, #tpu.memory_space<vmem>>, %arg14: memref<1x2x4xf32, #tpu.memory_space<vmem>>) attributes {dimension_semantics = [#tpu.dimension_semantics<parallel>], iteration_bounds = array<i64: 4>, scalar_prefetch = 0 : i64, scratch_operands = 0 : i64, tpu.core_type = #tpu.core_type<tc>, window_params = [{pipeline_mode = #tpu.pipeline_mode<synchronous>, transform_indices = @transform_0, window_bounds = array<i64: 288, 64>}, {transform_indices = @transform_1, window_bounds = array<i64: 1, 64, 16>}, {transform_indices = @transform_2, window_bounds = array<i64: 1, 1, 16>}, {transform_indices = @transform_3, window_bounds = array<i64: 1, 256, 32>}, {transform_indices = @transform_4, window_bounds = array<i64: 1, 1, 32>}, {transform_indices = @transform_5, window_bounds = array<i64: 1, 288, 32>}, {transform_indices = @transform_6, window_bounds = array<i64: 1, 1, 32>}, {transform_indices = @transform_7, window_bounds = array<i64: 1, 32, 256>}, {transform_indices = @transform_8, window_bounds = array<i64: 1, 1, 256>}, {transform_indices = @transform_9, window_bounds = array<i64: 1, 256, 256>}, {transform_indices = @transform_10, window_bounds = array<i64: 1, 1, 256>}, {transform_indices = @transform_11, window_bounds = array<i64: 1, 256, 5>}, {transform_indices = @transform_12, window_bounds = array<i64: 1, 1, 5>}, {transform_indices = @transform_13, window_bounds = array<i64: 1, 2, 4>}]} {
    %c0 = arith.constant 0 : index
    %c0_0 = arith.constant 0 : index
    %0 = vector.load %arg1[%c0, %c0_0] : memref<288x64xbf16, #tpu.memory_space<vmem>>, vector<288x64xbf16>
    %c0_1 = arith.constant 0 : index
    %c0_2 = arith.constant 0 : index
    %c0_3 = arith.constant 0 : index
    %1 = vector.load %arg2[%c0_1, %c0_2, %c0_3] : memref<1x64x16xbf16, #tpu.memory_space<vmem>>, vector<1x64x16xbf16>
    %2 = vector.shape_cast %1 : vector<1x64x16xbf16> to vector<64x16xbf16>
    %c0_4 = arith.constant 0 : index
    %c0_5 = arith.constant 0 : index
    %c0_6 = arith.constant 0 : index
    %3 = vector.load %arg3[%c0_4, %c0_5, %c0_6] : memref<1x1x16xf32, #tpu.memory_space<vmem>>, vector<1x1x16xf32>
    %4 = vector.shape_cast %3 : vector<1x1x16xf32> to vector<1x16xf32>
    %c0_7 = arith.constant 0 : index
    %c0_8 = arith.constant 0 : index
    %c0_9 = arith.constant 0 : index
    %5 = vector.load %arg4[%c0_7, %c0_8, %c0_9] : memref<1x256x32xbf16, #tpu.memory_space<vmem>>, vector<1x256x32xbf16>
    %6 = vector.shape_cast %5 : vector<1x256x32xbf16> to vector<256x32xbf16>
    %c0_10 = arith.constant 0 : index
    %c0_11 = arith.constant 0 : index
    %c0_12 = arith.constant 0 : index
    %7 = vector.load %arg5[%c0_10, %c0_11, %c0_12] : memref<1x1x32xf32, #tpu.memory_space<vmem>>, vector<1x1x32xf32>
    %8 = vector.shape_cast %7 : vector<1x1x32xf32> to vector<1x32xf32>
    %c0_13 = arith.constant 0 : index
    %c0_14 = arith.constant 0 : index
    %c0_15 = arith.constant 0 : index
    %9 = vector.load %arg6[%c0_13, %c0_14, %c0_15] : memref<1x288x32xbf16, #tpu.memory_space<vmem>>, vector<1x288x32xbf16>
    %10 = vector.shape_cast %9 : vector<1x288x32xbf16> to vector<288x32xbf16>
    %c0_16 = arith.constant 0 : index
    %c0_17 = arith.constant 0 : index
    %c0_18 = arith.constant 0 : index
    %11 = vector.load %arg7[%c0_16, %c0_17, %c0_18] : memref<1x1x32xf32, #tpu.memory_space<vmem>>, vector<1x1x32xf32>
    %12 = vector.shape_cast %11 : vector<1x1x32xf32> to vector<1x32xf32>
    %c0_19 = arith.constant 0 : index
    %c0_20 = arith.constant 0 : index
    %c0_21 = arith.constant 0 : index
    %13 = vector.load %arg8[%c0_19, %c0_20, %c0_21] : memref<1x32x256xbf16, #tpu.memory_space<vmem>>, vector<1x32x256xbf16>
    %14 = vector.shape_cast %13 : vector<1x32x256xbf16> to vector<32x256xbf16>
    %c0_22 = arith.constant 0 : index
    %c0_23 = arith.constant 0 : index
    %c0_24 = arith.constant 0 : index
    %15 = vector.load %arg9[%c0_22, %c0_23, %c0_24] : memref<1x1x256xf32, #tpu.memory_space<vmem>>, vector<1x1x256xf32>
    %16 = vector.shape_cast %15 : vector<1x1x256xf32> to vector<1x256xf32>
    %c0_25 = arith.constant 0 : index
    %c0_26 = arith.constant 0 : index
    %c0_27 = arith.constant 0 : index
    %17 = vector.load %arg10[%c0_25, %c0_26, %c0_27] : memref<1x256x256xbf16, #tpu.memory_space<vmem>>, vector<1x256x256xbf16>
    %18 = vector.shape_cast %17 : vector<1x256x256xbf16> to vector<256x256xbf16>
    %c0_28 = arith.constant 0 : index
    %c0_29 = arith.constant 0 : index
    %c0_30 = arith.constant 0 : index
    %19 = vector.load %arg11[%c0_28, %c0_29, %c0_30] : memref<1x1x256xf32, #tpu.memory_space<vmem>>, vector<1x1x256xf32>
    %20 = vector.shape_cast %19 : vector<1x1x256xf32> to vector<1x256xf32>
    %c0_31 = arith.constant 0 : index
    %c0_32 = arith.constant 0 : index
    %c0_33 = arith.constant 0 : index
    %21 = vector.load %arg12[%c0_31, %c0_32, %c0_33] : memref<1x256x5xbf16, #tpu.memory_space<vmem>>, vector<1x256x5xbf16>
    %22 = vector.shape_cast %21 : vector<1x256x5xbf16> to vector<256x5xbf16>
    %c0_34 = arith.constant 0 : index
    %c0_35 = arith.constant 0 : index
    %c0_36 = arith.constant 0 : index
    %23 = vector.load %arg13[%c0_34, %c0_35, %c0_36] : memref<1x1x5xf32, #tpu.memory_space<vmem>>, vector<1x1x5xf32>
    %24 = vector.shape_cast %23 : vector<1x1x5xf32> to vector<1x5xf32>
    %cst = arith.constant dense<0.000000e+00> : vector<288x16xf32>
    %25 = tpu.matmul %0, %2, %cst {dimension_numbers = #tpu.dot_dimension_numbers<[1], [0], [0], [1], [0, 0, 1, 1], [], []>} : vector<288x64xbf16>, vector<64x16xbf16>, vector<288x16xf32> -> vector<288x16xf32>
    %26 = vector.broadcast %4 : vector<1x16xf32> to vector<288x16xf32>
    %27 = arith.addf %25, %26 : vector<288x16xf32>
    %cst_37 = arith.constant 0.000000e+00 : f32
    %28 = vector.broadcast %cst_37 : f32 to vector<288x16xf32>
    %29 = arith.maximumf %27, %28 : vector<288x16xf32>
    %30 = arith.truncf %29 : vector<288x16xf32> to vector<288x16xbf16>
    %31 = vector.extract_strided_slice %30 {offsets = [0, 0], sizes = [18, 16], strides = [1, 1]} : vector<288x16xbf16> to vector<18x16xbf16>
    %32 = vector.extract_strided_slice %6 {offsets = [0, 0], sizes = [16, 32], strides = [1, 1]} : vector<256x32xbf16> to vector<16x32xbf16>
    %cst_38 = arith.constant dense<0.000000e+00> : vector<18x32xf32>
    %33 = tpu.matmul %31, %32, %cst_38 {dimension_numbers = #tpu.dot_dimension_numbers<[1], [0], [0], [1], [0, 0, 1, 1], [], []>} : vector<18x16xbf16>, vector<16x32xbf16>, vector<18x32xf32> -> vector<18x32xf32>
    %34 = vector.broadcast %8 : vector<1x32xf32> to vector<18x32xf32>
    %35 = arith.addf %34, %33 : vector<18x32xf32>
    %36 = vector.extract_strided_slice %30 {offsets = [18, 0], sizes = [18, 16], strides = [1, 1]} : vector<288x16xbf16> to vector<18x16xbf16>
    %37 = vector.extract_strided_slice %6 {offsets = [16, 0], sizes = [16, 32], strides = [1, 1]} : vector<256x32xbf16> to vector<16x32xbf16>
    %cst_39 = arith.constant dense<0.000000e+00> : vector<18x32xf32>
    %38 = tpu.matmul %36, %37, %cst_39 {dimension_numbers = #tpu.dot_dimension_numbers<[1], [0], [0], [1], [0, 0, 1, 1], [], []>} : vector<18x16xbf16>, vector<16x32xbf16>, vector<18x32xf32> -> vector<18x32xf32>
    %39 = arith.addf %35, %38 : vector<18x32xf32>
    %40 = vector.extract_strided_slice %30 {offsets = [36, 0], sizes = [18, 16], strides = [1, 1]} : vector<288x16xbf16> to vector<18x16xbf16>
    %41 = vector.extract_strided_slice %6 {offsets = [32, 0], sizes = [16, 32], strides = [1, 1]} : vector<256x32xbf16> to vector<16x32xbf16>
    %cst_40 = arith.constant dense<0.000000e+00> : vector<18x32xf32>
    %42 = tpu.matmul %40, %41, %cst_40 {dimension_numbers = #tpu.dot_dimension_numbers<[1], [0], [0], [1], [0, 0, 1, 1], [], []>} : vector<18x16xbf16>, vector<16x32xbf16>, vector<18x32xf32> -> vector<18x32xf32>
    %43 = arith.addf %39, %42 : vector<18x32xf32>
    %44 = vector.extract_strided_slice %30 {offsets = [54, 0], sizes = [18, 16], strides = [1, 1]} : vector<288x16xbf16> to vector<18x16xbf16>
    %45 = vector.extract_strided_slice %6 {offsets = [48, 0], sizes = [16, 32], strides = [1, 1]} : vector<256x32xbf16> to vector<16x32xbf16>
    %cst_41 = arith.constant dense<0.000000e+00> : vector<18x32xf32>
    %46 = tpu.matmul %44, %45, %cst_41 {dimension_numbers = #tpu.dot_dimension_numbers<[1], [0], [0], [1], [0, 0, 1, 1], [], []>} : vector<18x16xbf16>, vector<16x32xbf16>, vector<18x32xf32> -> vector<18x32xf32>
    %47 = arith.addf %43, %46 : vector<18x32xf32>
    %48 = vector.extract_strided_slice %30 {offsets = [72, 0], sizes = [18, 16], strides = [1, 1]} : vector<288x16xbf16> to vector<18x16xbf16>
    %49 = vector.extract_strided_slice %6 {offsets = [64, 0], sizes = [16, 32], strides = [1, 1]} : vector<256x32xbf16> to vector<16x32xbf16>
    %cst_42 = arith.constant dense<0.000000e+00> : vector<18x32xf32>
    %50 = tpu.matmul %48, %49, %cst_42 {dimension_numbers = #tpu.dot_dimension_numbers<[1], [0], [0], [1], [0, 0, 1, 1], [], []>} : vector<18x16xbf16>, vector<16x32xbf16>, vector<18x32xf32> -> vector<18x32xf32>
    %51 = arith.addf %47, %50 : vector<18x32xf32>
    %52 = vector.extract_strided_slice %30 {offsets = [90, 0], sizes = [18, 16], strides = [1, 1]} : vector<288x16xbf16> to vector<18x16xbf16>
    %53 = vector.extract_strided_slice %6 {offsets = [80, 0], sizes = [16, 32], strides = [1, 1]} : vector<256x32xbf16> to vector<16x32xbf16>
    %cst_43 = arith.constant dense<0.000000e+00> : vector<18x32xf32>
    %54 = tpu.matmul %52, %53, %cst_43 {dimension_numbers = #tpu.dot_dimension_numbers<[1], [0], [0], [1], [0, 0, 1, 1], [], []>} : vector<18x16xbf16>, vector<16x32xbf16>, vector<18x32xf32> -> vector<18x32xf32>
    %55 = arith.addf %51, %54 : vector<18x32xf32>
    %56 = vector.extract_strided_slice %30 {offsets = [108, 0], sizes = [18, 16], strides = [1, 1]} : vector<288x16xbf16> to vector<18x16xbf16>
    %57 = vector.extract_strided_slice %6 {offsets = [96, 0], sizes = [16, 32], strides = [1, 1]} : vector<256x32xbf16> to vector<16x32xbf16>
    %cst_44 = arith.constant dense<0.000000e+00> : vector<18x32xf32>
    %58 = tpu.matmul %56, %57, %cst_44 {dimension_numbers = #tpu.dot_dimension_numbers<[1], [0], [0], [1], [0, 0, 1, 1], [], []>} : vector<18x16xbf16>, vector<16x32xbf16>, vector<18x32xf32> -> vector<18x32xf32>
    %59 = arith.addf %55, %58 : vector<18x32xf32>
    %60 = vector.extract_strided_slice %30 {offsets = [126, 0], sizes = [18, 16], strides = [1, 1]} : vector<288x16xbf16> to vector<18x16xbf16>
    %61 = vector.extract_strided_slice %6 {offsets = [112, 0], sizes = [16, 32], strides = [1, 1]} : vector<256x32xbf16> to vector<16x32xbf16>
    %cst_45 = arith.constant dense<0.000000e+00> : vector<18x32xf32>
    %62 = tpu.matmul %60, %61, %cst_45 {dimension_numbers = #tpu.dot_dimension_numbers<[1], [0], [0], [1], [0, 0, 1, 1], [], []>} : vector<18x16xbf16>, vector<16x32xbf16>, vector<18x32xf32> -> vector<18x32xf32>
    %63 = arith.addf %59, %62 : vector<18x32xf32>
    %64 = vector.extract_strided_slice %30 {offsets = [144, 0], sizes = [18, 16], strides = [1, 1]} : vector<288x16xbf16> to vector<18x16xbf16>
    %65 = vector.extract_strided_slice %6 {offsets = [128, 0], sizes = [16, 32], strides = [1, 1]} : vector<256x32xbf16> to vector<16x32xbf16>
    %cst_46 = arith.constant dense<0.000000e+00> : vector<18x32xf32>
    %66 = tpu.matmul %64, %65, %cst_46 {dimension_numbers = #tpu.dot_dimension_numbers<[1], [0], [0], [1], [0, 0, 1, 1], [], []>} : vector<18x16xbf16>, vector<16x32xbf16>, vector<18x32xf32> -> vector<18x32xf32>
    %67 = arith.addf %63, %66 : vector<18x32xf32>
    %68 = vector.extract_strided_slice %30 {offsets = [162, 0], sizes = [18, 16], strides = [1, 1]} : vector<288x16xbf16> to vector<18x16xbf16>
    %69 = vector.extract_strided_slice %6 {offsets = [144, 0], sizes = [16, 32], strides = [1, 1]} : vector<256x32xbf16> to vector<16x32xbf16>
    %cst_47 = arith.constant dense<0.000000e+00> : vector<18x32xf32>
    %70 = tpu.matmul %68, %69, %cst_47 {dimension_numbers = #tpu.dot_dimension_numbers<[1], [0], [0], [1], [0, 0, 1, 1], [], []>} : vector<18x16xbf16>, vector<16x32xbf16>, vector<18x32xf32> -> vector<18x32xf32>
    %71 = arith.addf %67, %70 : vector<18x32xf32>
    %72 = vector.extract_strided_slice %30 {offsets = [180, 0], sizes = [18, 16], strides = [1, 1]} : vector<288x16xbf16> to vector<18x16xbf16>
    %73 = vector.extract_strided_slice %6 {offsets = [160, 0], sizes = [16, 32], strides = [1, 1]} : vector<256x32xbf16> to vector<16x32xbf16>
    %cst_48 = arith.constant dense<0.000000e+00> : vector<18x32xf32>
    %74 = tpu.matmul %72, %73, %cst_48 {dimension_numbers = #tpu.dot_dimension_numbers<[1], [0], [0], [1], [0, 0, 1, 1], [], []>} : vector<18x16xbf16>, vector<16x32xbf16>, vector<18x32xf32> -> vector<18x32xf32>
    %75 = arith.addf %71, %74 : vector<18x32xf32>
    %76 = vector.extract_strided_slice %30 {offsets = [198, 0], sizes = [18, 16], strides = [1, 1]} : vector<288x16xbf16> to vector<18x16xbf16>
    %77 = vector.extract_strided_slice %6 {offsets = [176, 0], sizes = [16, 32], strides = [1, 1]} : vector<256x32xbf16> to vector<16x32xbf16>
    %cst_49 = arith.constant dense<0.000000e+00> : vector<18x32xf32>
    %78 = tpu.matmul %76, %77, %cst_49 {dimension_numbers = #tpu.dot_dimension_numbers<[1], [0], [0], [1], [0, 0, 1, 1], [], []>} : vector<18x16xbf16>, vector<16x32xbf16>, vector<18x32xf32> -> vector<18x32xf32>
    %79 = arith.addf %75, %78 : vector<18x32xf32>
    %80 = vector.extract_strided_slice %30 {offsets = [216, 0], sizes = [18, 16], strides = [1, 1]} : vector<288x16xbf16> to vector<18x16xbf16>
    %81 = vector.extract_strided_slice %6 {offsets = [192, 0], sizes = [16, 32], strides = [1, 1]} : vector<256x32xbf16> to vector<16x32xbf16>
    %cst_50 = arith.constant dense<0.000000e+00> : vector<18x32xf32>
    %82 = tpu.matmul %80, %81, %cst_50 {dimension_numbers = #tpu.dot_dimension_numbers<[1], [0], [0], [1], [0, 0, 1, 1], [], []>} : vector<18x16xbf16>, vector<16x32xbf16>, vector<18x32xf32> -> vector<18x32xf32>
    %83 = arith.addf %79, %82 : vector<18x32xf32>
    %84 = vector.extract_strided_slice %30 {offsets = [234, 0], sizes = [18, 16], strides = [1, 1]} : vector<288x16xbf16> to vector<18x16xbf16>
    %85 = vector.extract_strided_slice %6 {offsets = [208, 0], sizes = [16, 32], strides = [1, 1]} : vector<256x32xbf16> to vector<16x32xbf16>
    %cst_51 = arith.constant dense<0.000000e+00> : vector<18x32xf32>
    %86 = tpu.matmul %84, %85, %cst_51 {dimension_numbers = #tpu.dot_dimension_numbers<[1], [0], [0], [1], [0, 0, 1, 1], [], []>} : vector<18x16xbf16>, vector<16x32xbf16>, vector<18x32xf32> -> vector<18x32xf32>
    %87 = arith.addf %83, %86 : vector<18x32xf32>
    %88 = vector.extract_strided_slice %30 {offsets = [252, 0], sizes = [18, 16], strides = [1, 1]} : vector<288x16xbf16> to vector<18x16xbf16>
    %89 = vector.extract_strided_slice %6 {offsets = [224, 0], sizes = [16, 32], strides = [1, 1]} : vector<256x32xbf16> to vector<16x32xbf16>
    %cst_52 = arith.constant dense<0.000000e+00> : vector<18x32xf32>
    %90 = tpu.matmul %88, %89, %cst_52 {dimension_numbers = #tpu.dot_dimension_numbers<[1], [0], [0], [1], [0, 0, 1, 1], [], []>} : vector<18x16xbf16>, vector<16x32xbf16>, vector<18x32xf32> -> vector<18x32xf32>
    %91 = arith.addf %87, %90 : vector<18x32xf32>
    %92 = vector.extract_strided_slice %30 {offsets = [270, 0], sizes = [18, 16], strides = [1, 1]} : vector<288x16xbf16> to vector<18x16xbf16>
    %93 = vector.extract_strided_slice %6 {offsets = [240, 0], sizes = [16, 32], strides = [1, 1]} : vector<256x32xbf16> to vector<16x32xbf16>
    %cst_53 = arith.constant dense<0.000000e+00> : vector<18x32xf32>
    %94 = tpu.matmul %92, %93, %cst_53 {dimension_numbers = #tpu.dot_dimension_numbers<[1], [0], [0], [1], [0, 0, 1, 1], [], []>} : vector<18x16xbf16>, vector<16x32xbf16>, vector<18x32xf32> -> vector<18x32xf32>
    %95 = arith.addf %91, %94 : vector<18x32xf32>
    %cst_54 = arith.constant 0.000000e+00 : f32
    %96 = vector.broadcast %cst_54 : f32 to vector<18x32xf32>
    %97 = arith.maximumf %95, %96 : vector<18x32xf32>
    %98 = arith.truncf %97 : vector<18x32xf32> to vector<18x32xbf16>
    %99 = vector.extract_strided_slice %98 {offsets = [0, 0], sizes = [2, 32], strides = [1, 1]} : vector<18x32xbf16> to vector<2x32xbf16>
    %100 = vector.extract_strided_slice %10 {offsets = [0, 0], sizes = [32, 32], strides = [1, 1]} : vector<288x32xbf16> to vector<32x32xbf16>
    %cst_55 = arith.constant dense<0.000000e+00> : vector<2x32xf32>
    %101 = tpu.matmul %99, %100, %cst_55 {dimension_numbers = #tpu.dot_dimension_numbers<[1], [0], [0], [1], [0, 0, 1, 1], [], []>} : vector<2x32xbf16>, vector<32x32xbf16>, vector<2x32xf32> -> vector<2x32xf32>
    %102 = vector.broadcast %12 : vector<1x32xf32> to vector<2x32xf32>
    %103 = arith.addf %102, %101 : vector<2x32xf32>
    %104 = vector.extract_strided_slice %98 {offsets = [2, 0], sizes = [2, 32], strides = [1, 1]} : vector<18x32xbf16> to vector<2x32xbf16>
    %105 = vector.extract_strided_slice %10 {offsets = [32, 0], sizes = [32, 32], strides = [1, 1]} : vector<288x32xbf16> to vector<32x32xbf16>
    %cst_56 = arith.constant dense<0.000000e+00> : vector<2x32xf32>
    %106 = tpu.matmul %104, %105, %cst_56 {dimension_numbers = #tpu.dot_dimension_numbers<[1], [0], [0], [1], [0, 0, 1, 1], [], []>} : vector<2x32xbf16>, vector<32x32xbf16>, vector<2x32xf32> -> vector<2x32xf32>
    %107 = arith.addf %103, %106 : vector<2x32xf32>
    %108 = vector.extract_strided_slice %98 {offsets = [4, 0], sizes = [2, 32], strides = [1, 1]} : vector<18x32xbf16> to vector<2x32xbf16>
    %109 = vector.extract_strided_slice %10 {offsets = [64, 0], sizes = [32, 32], strides = [1, 1]} : vector<288x32xbf16> to vector<32x32xbf16>
    %cst_57 = arith.constant dense<0.000000e+00> : vector<2x32xf32>
    %110 = tpu.matmul %108, %109, %cst_57 {dimension_numbers = #tpu.dot_dimension_numbers<[1], [0], [0], [1], [0, 0, 1, 1], [], []>} : vector<2x32xbf16>, vector<32x32xbf16>, vector<2x32xf32> -> vector<2x32xf32>
    %111 = arith.addf %107, %110 : vector<2x32xf32>
    %112 = vector.extract_strided_slice %98 {offsets = [6, 0], sizes = [2, 32], strides = [1, 1]} : vector<18x32xbf16> to vector<2x32xbf16>
    %113 = vector.extract_strided_slice %10 {offsets = [96, 0], sizes = [32, 32], strides = [1, 1]} : vector<288x32xbf16> to vector<32x32xbf16>
    %cst_58 = arith.constant dense<0.000000e+00> : vector<2x32xf32>
    %114 = tpu.matmul %112, %113, %cst_58 {dimension_numbers = #tpu.dot_dimension_numbers<[1], [0], [0], [1], [0, 0, 1, 1], [], []>} : vector<2x32xbf16>, vector<32x32xbf16>, vector<2x32xf32> -> vector<2x32xf32>
    %115 = arith.addf %111, %114 : vector<2x32xf32>
    %116 = vector.extract_strided_slice %98 {offsets = [8, 0], sizes = [2, 32], strides = [1, 1]} : vector<18x32xbf16> to vector<2x32xbf16>
    %117 = vector.extract_strided_slice %10 {offsets = [128, 0], sizes = [32, 32], strides = [1, 1]} : vector<288x32xbf16> to vector<32x32xbf16>
    %cst_59 = arith.constant dense<0.000000e+00> : vector<2x32xf32>
    %118 = tpu.matmul %116, %117, %cst_59 {dimension_numbers = #tpu.dot_dimension_numbers<[1], [0], [0], [1], [0, 0, 1, 1], [], []>} : vector<2x32xbf16>, vector<32x32xbf16>, vector<2x32xf32> -> vector<2x32xf32>
    %119 = arith.addf %115, %118 : vector<2x32xf32>
    %120 = vector.extract_strided_slice %98 {offsets = [10, 0], sizes = [2, 32], strides = [1, 1]} : vector<18x32xbf16> to vector<2x32xbf16>
    %121 = vector.extract_strided_slice %10 {offsets = [160, 0], sizes = [32, 32], strides = [1, 1]} : vector<288x32xbf16> to vector<32x32xbf16>
    %cst_60 = arith.constant dense<0.000000e+00> : vector<2x32xf32>
    %122 = tpu.matmul %120, %121, %cst_60 {dimension_numbers = #tpu.dot_dimension_numbers<[1], [0], [0], [1], [0, 0, 1, 1], [], []>} : vector<2x32xbf16>, vector<32x32xbf16>, vector<2x32xf32> -> vector<2x32xf32>
    %123 = arith.addf %119, %122 : vector<2x32xf32>
    %124 = vector.extract_strided_slice %98 {offsets = [12, 0], sizes = [2, 32], strides = [1, 1]} : vector<18x32xbf16> to vector<2x32xbf16>
    %125 = vector.extract_strided_slice %10 {offsets = [192, 0], sizes = [32, 32], strides = [1, 1]} : vector<288x32xbf16> to vector<32x32xbf16>
    %cst_61 = arith.constant dense<0.000000e+00> : vector<2x32xf32>
    %126 = tpu.matmul %124, %125, %cst_61 {dimension_numbers = #tpu.dot_dimension_numbers<[1], [0], [0], [1], [0, 0, 1, 1], [], []>} : vector<2x32xbf16>, vector<32x32xbf16>, vector<2x32xf32> -> vector<2x32xf32>
    %127 = arith.addf %123, %126 : vector<2x32xf32>
    %128 = vector.extract_strided_slice %98 {offsets = [14, 0], sizes = [2, 32], strides = [1, 1]} : vector<18x32xbf16> to vector<2x32xbf16>
    %129 = vector.extract_strided_slice %10 {offsets = [224, 0], sizes = [32, 32], strides = [1, 1]} : vector<288x32xbf16> to vector<32x32xbf16>
    %cst_62 = arith.constant dense<0.000000e+00> : vector<2x32xf32>
    %130 = tpu.matmul %128, %129, %cst_62 {dimension_numbers = #tpu.dot_dimension_numbers<[1], [0], [0], [1], [0, 0, 1, 1], [], []>} : vector<2x32xbf16>, vector<32x32xbf16>, vector<2x32xf32> -> vector<2x32xf32>
    %131 = arith.addf %127, %130 : vector<2x32xf32>
    %132 = vector.extract_strided_slice %98 {offsets = [16, 0], sizes = [2, 32], strides = [1, 1]} : vector<18x32xbf16> to vector<2x32xbf16>
    %133 = vector.extract_strided_slice %10 {offsets = [256, 0], sizes = [32, 32], strides = [1, 1]} : vector<288x32xbf16> to vector<32x32xbf16>
    %cst_63 = arith.constant dense<0.000000e+00> : vector<2x32xf32>
    %134 = tpu.matmul %132, %133, %cst_63 {dimension_numbers = #tpu.dot_dimension_numbers<[1], [0], [0], [1], [0, 0, 1, 1], [], []>} : vector<2x32xbf16>, vector<32x32xbf16>, vector<2x32xf32> -> vector<2x32xf32>
    %135 = arith.addf %131, %134 : vector<2x32xf32>
    %cst_64 = arith.constant 0.000000e+00 : f32
    %136 = vector.broadcast %cst_64 : f32 to vector<2x32xf32>
    %137 = arith.maximumf %135, %136 : vector<2x32xf32>
    %138 = arith.truncf %137 : vector<2x32xf32> to vector<2x32xbf16>
    %cst_65 = arith.constant dense<0.000000e+00> : vector<2x256xf32>
    %139 = tpu.matmul %138, %14, %cst_65 {dimension_numbers = #tpu.dot_dimension_numbers<[1], [0], [0], [1], [0, 0, 1, 1], [], []>} : vector<2x32xbf16>, vector<32x256xbf16>, vector<2x256xf32> -> vector<2x256xf32>
    %140 = vector.broadcast %16 : vector<1x256xf32> to vector<2x256xf32>
    %141 = arith.addf %139, %140 : vector<2x256xf32>
    %cst_66 = arith.constant 0.000000e+00 : f32
    %142 = vector.broadcast %cst_66 : f32 to vector<2x256xf32>
    %143 = arith.maximumf %141, %142 : vector<2x256xf32>
    %144 = arith.truncf %143 : vector<2x256xf32> to vector<2x256xbf16>
    %cst_67 = arith.constant dense<0.000000e+00> : vector<2x256xf32>
    %145 = tpu.matmul %144, %18, %cst_67 {dimension_numbers = #tpu.dot_dimension_numbers<[1], [0], [0], [1], [0, 0, 1, 1], [], []>} : vector<2x256xbf16>, vector<256x256xbf16>, vector<2x256xf32> -> vector<2x256xf32>
    %146 = vector.broadcast %20 : vector<1x256xf32> to vector<2x256xf32>
    %147 = arith.addf %145, %146 : vector<2x256xf32>
    %cst_68 = arith.constant 0.000000e+00 : f32
    %148 = vector.broadcast %cst_68 : f32 to vector<2x256xf32>
    %149 = arith.maximumf %147, %148 : vector<2x256xf32>
    %150 = arith.truncf %149 : vector<2x256xf32> to vector<2x256xbf16>
    %cst_69 = arith.constant dense<0.000000e+00> : vector<2x5xf32>
    %151 = tpu.matmul %150, %22, %cst_69 {dimension_numbers = #tpu.dot_dimension_numbers<[1], [0], [0], [1], [0, 0, 1, 1], [], []>} : vector<2x256xbf16>, vector<256x5xbf16>, vector<2x5xf32> -> vector<2x5xf32>
    %152 = vector.broadcast %24 : vector<1x5xf32> to vector<2x5xf32>
    %153 = arith.addf %151, %152 : vector<2x5xf32>
    %154 = vector.extract_strided_slice %153 {offsets = [0, 0], sizes = [2, 1], strides = [1, 1]} : vector<2x5xf32> to vector<2x1xf32>
    %155 = vector.extract_strided_slice %153 {offsets = [0, 1], sizes = [2, 4], strides = [1, 1]} : vector<2x5xf32> to vector<2x4xf32>
    %156 = vector.broadcast %154 : vector<2x1xf32> to vector<2x4xf32>
    %157 = arith.addf %156, %155 : vector<2x4xf32>
    %cst_70 = arith.constant dense<0.000000e+00> : vector<2xf32>
    %158 = vector.multi_reduction <add>, %155, %cst_70 [1] : vector<2x4xf32> to vector<2xf32>
    %159 = vector.shape_cast %158 : vector<2xf32> to vector<2x1xf32>
    %cst_71 = arith.constant 4.000000e+00 : f32
    %160 = vector.broadcast %cst_71 : f32 to vector<2x1xf32>
    %161 = arith.divf %159, %160 : vector<2x1xf32>
    %162 = vector.broadcast %161 : vector<2x1xf32> to vector<2x4xf32>
    %163 = arith.subf %157, %162 : vector<2x4xf32>
    %c0_72 = arith.constant 0 : index
    %c0_73 = arith.constant 0 : index
    %c0_74 = arith.constant 0 : index
    %164 = vector.load %arg14[%c0_72, %c0_73, %c0_74] : memref<1x2x4xf32, #tpu.memory_space<vmem>>, vector<1x2x4xf32>
    %165 = vector.shape_cast %164 : vector<1x2x4xf32> to vector<2x4xf32>
    %166 = vector.shape_cast %163 : vector<2x4xf32> to vector<1x2x4xf32>
    tpu.vector_store %arg14[%c0_72, %c0_73, %c0_74], %166 {strides = array<i32>} : memref<1x2x4xf32, #tpu.memory_space<vmem>>, vector<1x2x4xf32>,
    return
  }
  func.func @transform_0(%arg0: i32) -> (i32, i32) {
    %c0_i32 = arith.constant 0 : i32
    %c0_i32_0 = arith.constant 0 : i32
    %c0_i32_1 = arith.constant 0 : i32
    return %c0_i32, %c0_i32_0 : i32, i32
  }
  func.func @transform_1(%arg0: i32) -> (i32, i32, i32) {
    %c0_i32 = arith.constant 0 : i32
    %c0_i32_0 = arith.constant 0 : i32
    %c0_i32_1 = arith.constant 0 : i32
    return %arg0, %c0_i32, %c0_i32_0 : i32, i32, i32
  }
  func.func @transform_2(%arg0: i32) -> (i32, i32, i32) {
    %c0_i32 = arith.constant 0 : i32
    %c0_i32_0 = arith.constant 0 : i32
    %c0_i32_1 = arith.constant 0 : i32
    return %arg0, %c0_i32, %c0_i32_0 : i32, i32, i32
  }
  func.func @transform_3(%arg0: i32) -> (i32, i32, i32) {
    %c0_i32 = arith.constant 0 : i32
    %c0_i32_0 = arith.constant 0 : i32
    %c0_i32_1 = arith.constant 0 : i32
    return %arg0, %c0_i32, %c0_i32_0 : i32, i32, i32
  }
  func.func @transform_4(%arg0: i32) -> (i32, i32, i32) {
    %c0_i32 = arith.constant 0 : i32
    %c0_i32_0 = arith.constant 0 : i32
    %c0_i32_1 = arith.constant 0 : i32
    return %arg0, %c0_i32, %c0_i32_0 : i32, i32, i32
  }
  func.func @transform_5(%arg0: i32) -> (i32, i32, i32) {
    %c0_i32 = arith.constant 0 : i32
    %c0_i32_0 = arith.constant 0 : i32
    %c0_i32_1 = arith.constant 0 : i32
    return %arg0, %c0_i32, %c0_i32_0 : i32, i32, i32
  }
  func.func @transform_6(%arg0: i32) -> (i32, i32, i32) {
    %c0_i32 = arith.constant 0 : i32
    %c0_i32_0 = arith.constant 0 : i32
    %c0_i32_1 = arith.constant 0 : i32
    return %arg0, %c0_i32, %c0_i32_0 : i32, i32, i32
  }
  func.func @transform_7(%arg0: i32) -> (i32, i32, i32) {
    %c0_i32 = arith.constant 0 : i32
    %c0_i32_0 = arith.constant 0 : i32
    %c0_i32_1 = arith.constant 0 : i32
    return %arg0, %c0_i32, %c0_i32_0 : i32, i32, i32
  }
  func.func @transform_8(%arg0: i32) -> (i32, i32, i32) {
    %c0_i32 = arith.constant 0 : i32
    %c0_i32_0 = arith.constant 0 : i32
    %c0_i32_1 = arith.constant 0 : i32
    return %arg0, %c0_i32, %c0_i32_0 : i32, i32, i32
  }
  func.func @transform_9(%arg0: i32) -> (i32, i32, i32) {
    %c0_i32 = arith.constant 0 : i32
    %c0_i32_0 = arith.constant 0 : i32
    %c0_i32_1 = arith.constant 0 : i32
    return %arg0, %c0_i32, %c0_i32_0 : i32, i32, i32
  }
  func.func @transform_10(%arg0: i32) -> (i32, i32, i32) {
    %c0_i32 = arith.constant 0 : i32
    %c0_i32_0 = arith.constant 0 : i32
    %c0_i32_1 = arith.constant 0 : i32
    return %arg0, %c0_i32, %c0_i32_0 : i32, i32, i32
  }
  func.func @transform_11(%arg0: i32) -> (i32, i32, i32) {
    %c0_i32 = arith.constant 0 : i32
    %c0_i32_0 = arith.constant 0 : i32
    %c0_i32_1 = arith.constant 0 : i32
    return %arg0, %c0_i32, %c0_i32_0 : i32, i32, i32
  }
  func.func @transform_12(%arg0: i32) -> (i32, i32, i32) {
    %c0_i32 = arith.constant 0 : i32
    %c0_i32_0 = arith.constant 0 : i32
    %c0_i32_1 = arith.constant 0 : i32
    return %arg0, %c0_i32, %c0_i32_0 : i32, i32, i32
  }
  func.func @transform_13(%arg0: i32) -> (i32, i32, i32) {
    %c0_i32 = arith.constant 0 : i32
    %c0_i32_0 = arith.constant 0 : i32
    %c0_i32_1 = arith.constant 0 : i32
    return %arg0, %c0_i32, %c0_i32_0 : i32, i32, i32
  }
}

</mosaic_0001>

<bundles_post_ra>
// kernel: forward.1
= control target key start
LH: loop header
LB: loop body
LE: loop exit
PB: predicated region body
PF: predicated region fallthrough
CT: control target
= control target key end

     0   :  { %s4306_s25 = smov 0   ;;  %s4778_s0 = inlined_call_operand.vmem [shape: bf16[288,64], index: 0, kind: input, shape index: {}]   ;;  %s4779_s1 = inlined_call_operand.vmem [shape: bf16[4,64,16], index: 1, kind: input, shape index: {}]   ;;  %s4780_s2 = inlined_call_operand.vmem [shape: f32[4,1,16], index: 2, kind: input, shape index: {}]   ;;  %s4781_s3 = inlined_call_operand.vmem [shape: bf16[4,256,32], index: 3, kind: input, shape index: {}]   ;;  %s4782_s4 = inlined_call_operand.vmem [shape: f32[4,1,32], index: 4, kind: input, shape index: {}]   ;;  %s4783_s5 = inlined_call_operand.vmem [shape: bf16[4,288,32], index: 5, kind: input, shape index: {}]   ;;  %s4784_s6 = inlined_call_operand.vmem [shape: f32[4,1,32], index: 6, kind: input, shape index: {}]   ;;  %s4785_s7 = inlined_call_operand.vmem [shape: bf16[4,32,256], index: 7, kind: input, shape index: {}]   ;;  %s4786_s8 = inlined_call_operand.vmem [shape: f32[4,1,256], index: 8, kind: input, shape index: {}]   ;;  %s4787_s9 = inlined_call_operand.vmem [shape: bf16[4,256,256], index: 9, kind: input, shape index: {}]   ;;  %s4788_s10 = inlined_call_operand.vmem [shape: f32[4,1,256], index: 10, kind: input, shape index: {}]   ;;  %s4789_s11 = inlined_call_operand.vmem [shape: bf16[4,256,5], index: 11, kind: input, shape index: {}]   ;;  %s4790_s12 = inlined_call_operand.vmem [shape: f32[4,1,5], index: 12, kind: input, shape index: {}]   ;;  %s4791_s13 = inlined_call_operand.vmem [shape: f32[4,2,4], index: 13, kind: output, shape index: {}]  }
   0x1 LB: > { %s3459_s26 = sadd.s32 4294967295, %s4230_s25   ;;  %p3463_p0 = scmp.ge.s32.totalorder %s4230_s25, 1  ;;  %s4230_s25 = sphi %s4306_s25, %s23_s25  }
   0x2   : > { %p487_p1 = scmp.lt.s32.totalorder %s4230_s25, 5 }
   0x4   : > { %p488_p2 = pnand %p3463_p0, %p487_p1 }
   0x5   : > { %p575_p3 = scmp.lt.s32.totalorder (!%p488_p2), %s3459_s26, 3  ;;  %v4102_v0 = vld [vmem:[%s4778_s0] sm:$0xff] (!%p488_p2)   ;;  %vm936_vm0 = vcmask (!%p488_p2), 523264   ;;  %v4103_v5 = vld [vmem:[%s4778_s0 + $0x8] sm:$0xff] (!%p488_p2)   ;;  %v4104_v6 = vld [vmem:[%s4778_s0 + $0x10] sm:$0xff] (!%p488_p2)   ;;  %vm1228_vm1 = vcmask (!%p488_p2), 130048  }
   0x6   : > { %491 = sbr.rel (%p488_p2) target bundleno = 2004 (0x7d4), region = 72  ;;  %3784 = vmatprep.mubr.msk.bf16.mxu0 (!%p488_p2), %vm936_vm0, %v4102_v0  ;;  %v4105_v7 = vld [vmem:[%s4778_s0 + $0x18] sm:$0xff] (!%p488_p2)   ;;  %v4106_v8 = vld [vmem:[%s4778_s0 + $0x20] sm:$0xff] (!%p488_p2)   ;;  %v4107_v9 = vld [vmem:[%s4778_s0 + $0x28] sm:$0xff] (!%p488_p2)   ;;  %vm1294_vm2 = vcmask (!%p488_p2), 1046528   ;;  %vm1362_vm3 = vcmask (!%p488_p2), 1045504  }
   0x7   : > { %v4108_v10 = vld [vmem:[%s4778_s0 + $0x30] sm:$0xff] (!%p488_p2)   ;;  %v4109_v11 = vld [vmem:[%s4778_s0 + $0x38] sm:$0xff] (!%p488_p2)   ;;  %v4110_v12 = vld [vmem:[%s4778_s0 + $0x40] sm:$0xff] (!%p488_p2)   ;;  %vm1430_vm4 = vcmask (!%p488_p2), 1044480   ;;  %vm1498_vm5 = vcmask (!%p488_p2), 1043456   ;;  %vm1566_vm6 = vcmask (!%p488_p2), 1042432  }
   0x8   : > { %v4111_v13 = vld [vmem:[%s4778_s0 + $0x48] sm:$0xff] (!%p488_p2)   ;;  %v4112_v14 = vld [vmem:[%s4778_s0 + $0x50] sm:$0xff] (!%p488_p2)   ;;  %v4113_v15 = vld [vmem:[%s4778_s0 + $0x58] sm:$0xff] (!%p488_p2)   ;;  %vm1634_vm7 = vcmask (!%p488_p2), 1041408   ;;  %vm1702_vm8 = vcmask (!%p488_p2), 1040384   ;;  %vm4233_vm9 = vmmov (!%p488_p2), 0  }
   0x9   : > { %v4114_v16 = vld [vmem:[%s4778_s0 + $0x60] sm:$0xff] (!%p488_p2)   ;;  %v4115_v17 = vld [vmem:[%s4778_s0 + $0x68] sm:$0xff] (!%p488_p2)   ;;  %v4116_v18 = vld [vmem:[%s4778_s0 + $0x70] sm:$0xff] (!%p488_p2)   ;;  %vm2319_vm10 = vcmask (!%p488_p2), 261120   ;;  %vm3274_vm11 = vcmask (!%p488_p2), 25600  }
   0xa   : > { %v4117_v19 = vld [vmem:[%s4778_s0 + $0x78] sm:$0xff] (!%p488_p2)   ;;  %v4118_v20 = vld [vmem:[%s4778_s0 + $0x80] sm:$0xff] (!%p488_p2)   ;;  %v4119_v21 = vld [vmem:[%s4778_s0 + $0x88] sm:$0xff] (!%p488_p2)  }
   0xd   : > { %s4793_s26 = smov (!%p575_p3, %s3459_s26), 3 }
   0xe   : > { %s3652_s29 = sshll.u32 %s4793_s26, 5  ;;  %s3653_s16 = sshll.u32 %s4793_s26, 7 }
   0xf   : > { %s579_s15 = scalar_lea.vmem %s4779_s1, %s3652_s29  ;;  %s4333_s21 = scalar_lea.vmem %s4781_s3, %s3653_s16 }
  0x10   : > { %v4098_v1 = vld [vmem:[%s579_s15] sm:$0xff]   ;;  %v4099_v2 = vld [vmem:[%s579_s15 + $0x8] sm:$0xff]   ;;  %v4100_v3 = vld [vmem:[%s579_s15 + $0x10] sm:$0xff]   ;;  %s4083_s24 = smul.u32 144, %s4793_s26  ;;  %s3655_s27 = sshll.u32 %s4793_s26, 8 }
  0x11   : > { %3776 = vmatprep.subr.bf16.mxu0 %v4098_v1  ;;  %v4101_v4 = vld [vmem:[%s579_s15 + $0x18] sm:$0xff]   ;;  %s4372_s20 = scalar_lea.vmem %s4787_s9, %s3655_s27  ;;  %s4385_s15 = scalar_lea.vmem %s4789_s11, %s3653_s16  ;;  %v4120_v22 = vld [vmem:[%s4333_s21] sm:$0xff]   ;;  %v4121_v23 = vld [vmem:[%s4333_s21 + $0x8] sm:$0xff]  }
  0x12   : > { %3777 = vmatpush3.bf16.msra.mxu0 %v4098_v1  ;;  %s4351_s19 = scalar_lea.vmem %s4783_s5, %s4083_s24  ;;  %3826 = vmatprep.subr.bf16.mxu1 %v4121_v23  ;;  %v4122_v24 = vld [vmem:[%s4333_s21 + $0x10] sm:$0xff]   ;;  %s582_s28 = scalar_lea.vmem %s4780_s2, %s4793_s26 }
  0x13   : > { %3778 = vmatprep.subr.bf16.mxu0 %v4099_v2  ;;  %3827 = vmatpush3.bf16.msra.mxu1 %v4121_v23  ;;  %v4424_v25 = vld [vmem:[%s582_s28] ss:$0 sm:$0xff]  ;;  %s4628_s17 = scalar_lea.vmem %s4785_s7, %s3652_s29  ;;  %s598_s18 = scalar_lea.vmem %s4784_s6, %s4793_s26 }
  0x14   : > { %3832 = vmatprep.subr.bf16.mxu1 %v4122_v24  ;;  %s624_s24 = scalar_lea.vmem %s4790_s12, %s4793_s26  ;;  %s4235_s27 = smov 127  }
  0x16   : > { %3779 = vmatpush3.bf16.msra.mxu0 %v4099_v2 }
  0x17   : > { %3780 = vmatprep.subr.bf16.mxu0 %v4100_v3 }
  0x1a   : > { %3781 = vmatpush3.bf16.msra.mxu0 %v4100_v3 }
  0x1b   : > { %3782 = vmatprep.subr.bf16.mxu0 %v4101_v4 }
  0x1e   : > { %3783 = vmatpush3.bf16.msra.mxu0 %v4101_v4 }
  0x1f   : > { %3820 = vmatprep.subr.bf16.mxu0 %v4120_v22 }
  0x21   : > { %3785 = vmatmul.mubr.msk.bf16.vlgmr.msra.gmra.mrb[0].mxu0 %vm936_vm0, %v4103_v5 }
  0x22   : > { %3788 = vmatprep.mubr.msk.bf16.mxu0 %vm936_vm0, %v4104_v6  ;;  %3821 = vmatpush3.bf16.msra.mxu0 %v4120_v22  ;;  %v4123_v6 = vld [vmem:[%s4333_s21 + $0x18] sm:$0xff]  }
  0x29   : > { %3789 = vmatmul.mubr.msk.bf16.gmra.mrb[4].mxu0 %vm936_vm0, %v4105_v7 }
  0x2a   : > { %3792 = vmatprep.mubr.msk.bf16.mxu0 %vm936_vm0, %v4106_v8 }
  0x31   : > { %3793 = vmatmul.mubr.msk.bf16.gmra.mrb[8].mxu0 %vm936_vm0, %v4107_v9 }
  0x32   : > { %3796 = vmatprep.mubr.msk.bf16.mxu0 %vm936_vm0, %v4108_v10 }
  0x39   : > { %3797 = vmatmul.mubr.msk.bf16.gmra.mrb[12].mxu0 %vm936_vm0, %v4109_v11 }
  0x3a   : > { %3800 = vmatprep.mubr.msk.bf16.mxu0 %vm936_vm0, %v4110_v12 }
  0x41   : > { %3801 = vmatmul.mubr.msk.bf16.gmra.mrb[16].mxu0 %vm936_vm0, %v4111_v13 }
  0x42   : > { %3804 = vmatprep.mubr.msk.bf16.mxu0 %vm936_vm0, %v4112_v14 }
  0x49   : > { %3805 = vmatmul.mubr.msk.bf16.gmra.mrb[20].mxu0 %vm936_vm0, %v4113_v15 }
  0x4a   : > { %3808 = vmatprep.mubr.msk.bf16.mxu0 %vm936_vm0, %v4114_v16 }
  0x51   : > { %3809 = vmatmul.mubr.msk.bf16.gmra.mrb[24].mxu0 %vm936_vm0, %v4115_v17 }
  0x52   : > { %3812 = vmatprep.mubr.msk.bf16.mxu0 %vm936_vm0, %v4116_v18 }
  0x59   : > { %3813 = vmatmul.mubr.msk.bf16.gmra.mrb[28].mxu0 %vm936_vm0, %v4117_v19 }
  0x5a   : > { %3816 = vmatprep.mubr.msk.bf16.mxu0 %vm936_vm0, %v4118_v20 }
  0x61   : > { %3817 = vmatmul.mubr.msk.bf16.gmra.mrb[32].mxu0 %vm936_vm0, %v4119_v21 }
  0xf4   : > { %v3786_v26 = vpop.f32.mrb[0].mxu0 }
  0xf5   : > { %v1034_v27 = vadd.f32 %v3786_v26, %v4424_v25  ;;  %v1025_v28 = vpop.f32.mrb[1].mxu0 }
  0xf6   : > { %v1026_v29 = vadd.f32 %v4424_v25, %v1025_v28  ;;  %v3787_v30 = vpop.f32.mrb[2].mxu0 }
  0xf7   : > { %v1037_v31 = vadd.f32 %v3787_v30, %v4424_v25  ;;  %v1028_v32 = vpop.f32.mrb[3].mxu0  ;;  %v1170_v34 = vmax.f32 %v1034_v27, 0.0 }
  0xf8   : > { %v1029_v33 = vadd.f32 %v4424_v25, %v1028_v32  ;;  %v1168_v36 = vmax.f32 %v1026_v29, 0.0 }
  0xf9   : > { %v1171_v35 = vmax.f32 %v1037_v31, 0.0 }
  0xfa   : > { %v1169_v37 = vmax.f32 %v1029_v33, 0.0  ;;  %v4124_v33 = vld [vmem:[%s4333_s21 + $0x20] sm:$0xff]  }
  0xfb   : > { %v1205_v38 = vpack.c.bf16 %v1171_v35, %v1170_v34 }
  0xfc   : > { %v1204_v39 = vpack.c.bf16 %v1169_v37, %v1168_v36  ;;  %v3790_v40 = vpop.f32.mrb[4].mxu0 }
  0xfd   : > { %v1050_v41 = vadd.f32 %v3790_v40, %v4424_v25  ;;  %v1041_v42 = vpop.f32.mrb[5].mxu0  ;;  %v1295_v61 = vrot.slane %v1205_v38, 1 }
  0xfe   : > { %v1042_v43 = vadd.f32 %v4424_v25, %v1041_v42  ;;  %v3791_v44 = vpop.f32.mrb[6].mxu0  ;;  %3822 = vmatprep.mubr.msk.bf16.mxu0 %vm1228_vm1, %v1204_v39 }
  0xff   : > { %v1053_v45 = vadd.f32 %v3791_v44, %v4424_v25  ;;  %v1044_v46 = vpop.f32.mrb[7].mxu0  ;;  %3823 = vmatmul.mubr.msk.bf16.vlgmr.msra.gmra.mrb[36].mxu0 %vm1228_vm1, %v1205_v38  ;;  %v1174_v48 = vmax.f32 %v1050_v41, 0.0 }
 0x100   : > { %v1045_v47 = vadd.f32 %v4424_v25, %v1044_v46  ;;  %v1172_v50 = vmax.f32 %v1042_v43, 0.0 }
 0x101   : > { %v1175_v49 = vmax.f32 %v1053_v45, 0.0 }
 0x102   : > { %v1173_v51 = vmax.f32 %v1045_v47, 0.0 }
 0x103   : > { %v4436_v52 = vpack.c.bf16 %v1175_v49, %v1174_v48 }
 0x104   : > { %v1206_v53 = vpack.c.bf16 %v1173_v51, %v1172_v50  ;;  %v3794_v54 = vpop.f32.mrb[8].mxu0 }
 0x105   : > { %v1364_v55 = vrot.slane %v4436_v52, 2  ;;  %v1066_v56 = vadd.f32 %v3794_v54, %v4424_v25  ;;  %v1057_v57 = vpop.f32.mrb[9].mxu0  ;;  %v1431_v15 = vrot.slane %v4436_v52, 3 }
 0x106   : > { %v1363_v58 = vrot.slane %v1206_v53, 2  ;;  %v1058_v59 = vadd.f32 %v4424_v25, %v1057_v57  ;;  %v3795_v60 = vpop.f32.mrb[10].mxu0  ;;  %v1296_v62 = vrot.slane %v1206_v53, 1 }
 0x107   : > { %v1178_v63 = vmax.f32 %v1066_v56, 0.0  ;;  %v1069_v0 = vadd.f32 %v3795_v60, %v4424_v25  ;;  %v1060_v1 = vpop.f32.mrb[11].mxu0 }
 0x108   : > { %v1176_v2 = vmax.f32 %v1058_v59, 0.0  ;;  %v1061_v3 = vadd.f32 %v4424_v25, %v1060_v1  ;;  %v1297_v4 = vsel %vm1294_vm2, %v1295_v61, %v1296_v62  ;;  %v1365_v5 = vsel %vm1362_vm3, %v1363_v58, %v1364_v55 }
 0x109   : > { %v1179_v7 = vmax.f32 %v1069_v0, 0.0  ;;  %3828 = vmatprep.mubr.msk.bf16.mxu1 %vm1228_vm1, %v1297_v4 }
 0x10a   : > { %v1177_v8 = vmax.f32 %v1061_v3, 0.0  ;;  %3829 = vmatmul.mubr.msk.bf16.vlgmr.msra.gmra.mrb[0].mxu1 %vm1228_vm1, %v1296_v62 }
 0x10b   : > { %v4448_v9 = vpack.c.bf16 %v1179_v7, %v1178_v63  ;;  %3833 = vmatpush3.bf16.msra.mxu1 %v4122_v24  ;;  %3834 = vmatprep.mubr.msk.bf16.mxu1 %vm1228_vm1, %v1365_v5  ;;  %v4125_v63 = vld [vmem:[%s4333_s21 + $0x28] sm:$0xff]  }
 0x10c   : > { %v4451_v10 = vpack.c.bf16 %v1177_v8, %v1176_v2  ;;  %v3798_v11 = vpop.f32.mrb[12].mxu0  ;;  %3838 = vmatprep.subr.bf16.mxu1 %v4123_v6 }
 0x10d   : > { %v1500_v12 = vrot.slane %v4448_v9, 4  ;;  %v1082_v13 = vadd.f32 %v3798_v11, %v4424_v25  ;;  %v1073_v14 = vpop.f32.mrb[13].mxu0  ;;  %v1567_v31 = vrot.slane %v4448_v9, 5 }
 0x10e   : > { %v1432_v16 = vrot.slane %v4451_v10, 3  ;;  %v1499_v17 = vrot.slane %v4451_v10, 4  ;;  %v1074_v18 = vadd.f32 %v4424_v25, %v1073_v14  ;;  %v3799_v19 = vpop.f32.mrb[14].mxu0 }
 0x10f   : > { %v1182_v20 = vmax.f32 %v1082_v13, 0.0  ;;  %v1085_v21 = vadd.f32 %v3799_v19, %v4424_v25  ;;  %v1076_v22 = vpop.f32.mrb[15].mxu0 }
 0x110   : > { %v1180_v23 = vmax.f32 %v1074_v18, 0.0  ;;  %v1077_v24 = vadd.f32 %v4424_v25, %v1076_v22  ;;  %v1433_v26 = vsel %vm1430_vm4, %v1431_v15, %v1432_v16  ;;  %v1501_v27 = vsel %vm1498_vm5, %v1499_v17, %v1500_v12 }
 0x111   : > { %v1183_v28 = vmax.f32 %v1085_v21, 0.0 }
 0x112   : > { %v1181_v29 = vmax.f32 %v1077_v24, 0.0 }
 0x113   : > { %v4465_v30 = vpack.c.bf16 %v1183_v28, %v1182_v20 }
 0x114   : > { %v4468_v32 = vpack.c.bf16 %v1181_v29, %v1180_v23  ;;  %v3802_v34 = vpop.f32.mrb[16].mxu0 }
 0x115   : > { %v1636_v35 = vrot.slane %v4465_v30, 6  ;;  %v1098_v36 = vadd.f32 %v3802_v34, %v4424_v25  ;;  %v1089_v37 = vpop.f32.mrb[17].mxu0  ;;  %v1703_v52 = vrot.slane %v4465_v30, 7  ;;  %v4130_v30 = vld [vmem:[%s4333_s21 + $0x50] sm:$0xff]  }
 0x116   : > { %v1568_v38 = vrot.slane %v4468_v32, 5  ;;  %v1635_v39 = vrot.slane %v4468_v32, 6  ;;  %3835 = vmatmul.mubr.msk.bf16.vlgmr.msra.gmra.mrb[0].mxu1 %vm1228_vm1, %v1364_v55  ;;  %v1090_v40 = vadd.f32 %v4424_v25, %v1089_v37  ;;  %v3803_v41 = vpop.f32.mrb[18].mxu0 }
 0x117   : > { %3839 = vmatpush3.bf16.msra.mxu1 %v4123_v6  ;;  %3840 = vmatprep.mubr.msk.bf16.mxu1 %vm1228_vm1, %v1433_v26  ;;  %v1186_v42 = vmax.f32 %v1098_v36, 0.0  ;;  %v1101_v43 = vadd.f32 %v3803_v41, %v4424_v25  ;;  %v1092_v44 = vpop.f32.mrb[19].mxu0  ;;  %v4126_v26 = vld [vmem:[%s4333_s21 + $0x30] sm:$0xff]  }
 0x118   : > { %3844 = vmatprep.subr.bf16.mxu1 %v4124_v33  ;;  %v1184_v45 = vmax.f32 %v1090_v40, 0.0  ;;  %v1093_v46 = vadd.f32 %v4424_v25, %v1092_v44  ;;  %v1569_v47 = vsel %vm1566_vm6, %v1567_v31, %v1568_v38  ;;  %v4486_v48 = vsel %vm1634_vm7, %v1635_v39, %v1636_v35 }
 0x119   : > { %v1187_v49 = vmax.f32 %v1101_v43, 0.0 }
 0x11a   : > { %v1185_v50 = vmax.f32 %v1093_v46, 0.0 }
 0x11b   : > { %v4488_v51 = vpack.c.bf16 %v1187_v49, %v1186_v42 }
 0x11c   : > { %v4491_v53 = vpack.c.bf16 %v1185_v50, %v1184_v45  ;;  %v3806_v54 = vpop.f32.mrb[20].mxu0 }
 0x11d   : > { %v1114_v55 = vadd.f32 %v3806_v54, %v4424_v25  ;;  %v1105_v56 = vpop.f32.mrb[21].mxu0 }
 0x11e   : > { %v1704_v57 = vrot.slane %v4491_v53, 7  ;;  %v1106_v58 = vadd.f32 %v4424_v25, %v1105_v56  ;;  %v3807_v59 = vpop.f32.mrb[22].mxu0  ;;  %v4133_v53 = vld [vmem:[%s4333_s21 + $0x68] sm:$0xff]  }
 0x11f   : > { %v1190_v60 = vmax.f32 %v1114_v55, 0.0  ;;  %v1117_v61 = vadd.f32 %v3807_v59, %v4424_v25  ;;  %v1108_v62 = vpop.f32.mrb[23].mxu0 }
 0x120   : > { %v4501_v0 = vsel %vm1702_vm8, %v1703_v52, %v1704_v57  ;;  %v1188_v1 = vmax.f32 %v1106_v58, 0.0  ;;  %v1109_v2 = vadd.f32 %v4424_v25, %v1108_v62 }
 0x121   : > { %v1191_v3 = vmax.f32 %v1117_v61, 0.0 }
 0x122   : > { %3841 = vmatmul.mubr.msk.bf16.vlgmr.msra.gmra.mrb[0].mxu1 %vm1228_vm1, %v1432_v16  ;;  %v1189_v4 = vmax.f32 %v1109_v2, 0.0 }
 0x123   : > { %3845 = vmatpush3.bf16.msra.mxu1 %v4124_v33  ;;  %3846 = vmatprep.mubr.msk.bf16.mxu1 %vm1228_vm1, %v1501_v27  ;;  %v4506_v5 = vpack.c.bf16 %v1191_v3, %v1190_v60  ;;  %v4127_v3 = vld [vmem:[%s4333_s21 + $0x38] sm:$0xff]  }
 0x124   : > { %3850 = vmatprep.subr.bf16.mxu1 %v4125_v63  ;;  %v4508_v6 = vpack.c.bf16 %v1189_v4, %v1188_v1  ;;  %v3810_v7 = vpop.f32.mrb[24].mxu0 }
 0x125   : > { %v1835_v8 = vrot.slane %v4506_v5, 1  ;;  %v1130_v10 = vadd.f32 %v3810_v7, %v4424_v25  ;;  %v1121_v11 = vpop.f32.mrb[25].mxu0  ;;  %v1901_v27 = vrot.slane %v4506_v5, 2 }
 0x126   : > { %v1834_v13 = vrot.slane %v4508_v6, 1  ;;  %v1122_v14 = vadd.f32 %v4424_v25, %v1121_v11  ;;  %v3811_v15 = vpop.f32.mrb[26].mxu0 }
 0x127   : > { %v1194_v16 = vmax.f32 %v1130_v10, 0.0  ;;  %v1133_v17 = vadd.f32 %v3811_v15, %v4424_v25  ;;  %v1124_v18 = vpop.f32.mrb[27].mxu0 }
 0x128   : > { %v1192_v19 = vmax.f32 %v1122_v14, 0.0  ;;  %v1125_v20 = vadd.f32 %v4424_v25, %v1124_v18  ;;  %v4519_v21 = vsel %vm1294_vm2, %v1834_v13, %v1835_v8 }
 0x129   : > { %v1195_v22 = vmax.f32 %v1133_v17, 0.0 }
 0x12a   : > { %v1193_v23 = vmax.f32 %v1125_v20, 0.0 }
 0x12b   : > { %v4521_v24 = vpack.c.bf16 %v1195_v22, %v1194_v16 }
 0x12c   : > { %v4525_v28 = vpack.c.bf16 %v1193_v23, %v1192_v19  ;;  %v3814_v29 = vpop.f32.mrb[28].mxu0 }
 0x12d   : > { %v1969_v31 = vrot.slane %v4521_v24, 3  ;;  %v1146_v33 = vadd.f32 %v3814_v29, %v4424_v25  ;;  %v1137_v34 = vpop.f32.mrb[29].mxu0  ;;  %v2035_v50 = vrot.slane %v4521_v24, 4  ;;  %v4136_v24 = vld [vmem:[%s4351_s19] sm:$0xff]  }
 0x12e   : > { %3847 = vmatmul.mubr.msk.bf16.vlgmr.msra.gmra.mrb[0].mxu1 %vm1228_vm1, %v1500_v12  ;;  %v1902_v36 = vrot.slane %v4525_v28, 2  ;;  %v1968_v37 = vrot.slane %v4525_v28, 3  ;;  %v1138_v39 = vadd.f32 %v4424_v25, %v1137_v34  ;;  %v3815_v40 = vpop.f32.mrb[30].mxu0  ;;  %v4154_v28 = vld [vmem:[%s4628_s17] ss:$8 sps:$4 sm:$0xff]  }
 0x12f   : > { %3851 = vmatpush3.bf16.msra.mxu1 %v4125_v63  ;;  %3852 = vmatprep.mubr.msk.bf16.mxu1 %vm1228_vm1, %v1569_v47  ;;  %v1198_v41 = vmax.f32 %v1146_v33, 0.0  ;;  %v1149_v42 = vadd.f32 %v3815_v40, %v4424_v25  ;;  %v1140_v43 = vpop.f32.mrb[31].mxu0  ;;  %v4156_v29 = vld [vmem:[%s4628_s17 + $0x4] ss:$8 sps:$4 sm:$0xff]  }
 0x130   : > { %3856 = vmatprep.subr.bf16.mxu1 %v4126_v26  ;;  %v1196_v44 = vmax.f32 %v1138_v39, 0.0  ;;  %v1141_v9 = vadd.f32 %v4424_v25, %v1140_v43  ;;  %v1903_v12 = vsel %vm1362_vm3, %v1901_v27, %v1902_v36  ;;  %v1970_v45 = vsel %vm1430_vm4, %v1968_v37, %v1969_v31  ;;  %v4137_v27 = vld [vmem:[%s4351_s19 + $0x8] sm:$0xff]  }
 0x131   : > { %v1199_v46 = vmax.f32 %v1149_v42, 0.0 }
 0x132   : > { %v1197_v49 = vmax.f32 %v1141_v9, 0.0  ;;  %v4138_v9 = vld [vmem:[%s4351_s19 + $0x10] sm:$0xff]  }
 0x133   : > { %v4544_v47 = vpack.c.bf16 %v1199_v46, %v1198_v41  ;;  %v4140_v46 = vld [vmem:[%s4351_s19 + $0x20] sm:$0xff]  }
 0x134   : > { %v4547_v52 = vpack.c.bf16 %v1197_v49, %v1196_v44  ;;  %v3818_v54 = vpop.f32.mrb[32].mxu0 }
 0x135   : > { %v2103_v55 = vrot.slane %v4544_v47, 5  ;;  %v1162_v56 = vadd.f32 %v3818_v54, %v4424_v25  ;;  %v1153_v58 = vpop.f32.mrb[33].mxu0  ;;  %v4143_v54 = vld [vmem:[%s4351_s19 + $0x38] sm:$0xff]  }
 0x136   : > { %v2036_v59 = vrot.slane %v4547_v52, 4  ;;  %v2102_v60 = vrot.slane %v4547_v52, 5  ;;  %v1154_v61 = vadd.f32 %v4424_v25, %v1153_v58  ;;  %v3819_v62 = vpop.f32.mrb[34].mxu0  ;;  %v4145_v58 = vld [vmem:[%s4351_s19 + $0x48] sm:$0xff]  }
 0x137   : > { %v1202_v63 = vmax.f32 %v1162_v56, 0.0  ;;  %v1165_v1 = vadd.f32 %v3819_v62, %v4424_v25  ;;  %v1156_v2 = vpop.f32.mrb[35].mxu0  ;;  %v4148_v62 = vld [vmem:[%s4351_s19 + $0x60] sm:$0xff]  }
 0x138   : > { %v1200_v4 = vmax.f32 %v1154_v61, 0.0  ;;  %v1157_v7 = vadd.f32 %v4424_v25, %v1156_v2  ;;  %v2037_v10 = vsel %vm1498_vm5, %v2035_v50, %v2036_v59  ;;  %v2104_v11 = vsel %vm1566_vm6, %v2102_v60, %v2103_v55  ;;  %v4142_v50 = vld [vmem:[%s4351_s19 + $0x30] sm:$0xff]   ;;  %v4147_v61 = vld [vmem:[%s4351_s19 + $0x58] sm:$0xff]  }
 0x139   : > { %v1203_v13 = vmax.f32 %v1165_v1, 0.0  ;;  %v2169_v25 = vrot.slane %v4544_v47, 6  ;;  %v4141_v47 = vld [vmem:[%s4351_s19 + $0x28] sm:$0xff]   ;;  %v4150_v2 = vld [vmem:[%s4351_s19 + $0x70] sm:$0xff]  }
 0x13a   : > { %3853 = vmatmul.mubr.msk.bf16.vlgmr.msra.gmra.mrb[0].mxu1 %vm1228_vm1, %v1568_v38  ;;  %v1201_v14 = vmax.f32 %v1157_v7, 0.0  ;;  %v4128_v38 = vld [vmem:[%s4333_s21 + $0x40] sm:$0xff]   ;;  %v4149_v1 = vld [vmem:[%s4351_s19 + $0x68] sm:$0xff]  }
 0x13b   : > { %3857 = vmatpush3.bf16.msra.mxu1 %v4126_v26  ;;  %3858 = vmatprep.mubr.msk.bf16.mxu1 %vm1228_vm1, %v4486_v48  ;;  %v1221_v15 = vpack.c.bf16 %v1203_v13, %v1202_v63  ;;  %v4129_v48 = vld [vmem:[%s4333_s21 + $0x48] sm:$0xff]   ;;  %v4232_v26 = vmov 0.0   ;;  %v4152_v7 = vld [vmem:[%s4351_s19 + $0x80] sm:$0xff]  }
 0x13c   : > { %3862 = vmatprep.subr.bf16.mxu1 %v4127_v3  ;;  %v1220_v16 = vpack.c.bf16 %v1201_v14, %v1200_v4  ;;  %3916 = vmatprep.subr.bf16.mxu0 %v4232_v26  ;;  %v4151_v4 = vld [vmem:[%s4351_s19 + $0x78] sm:$0xff]  }
 0x13d   : > { %v2237_v17 = vrot.slane %v1221_v15, 7  ;;  %3917 = vmatpush3.bf16.msra.mxu0 %v4136_v24  ;;  %3920 = vmatprep.mubr.msk.bf16.mxu0 %vm4233_vm9, %v4232_v26  ;;  %v4159_v15 = vld [vmem:[%s4628_s17 + $0x14] ss:$8 sps:$4 sm:$0xff]   ;;  %v4175_v24 = vld [vmem:[%s4372_s20 + $0x50] ss:$8 sps:$4 sm:$0xff]  }
 0x13e   : > { %v2170_v18 = vrot.slane %v1220_v16, 6  ;;  %v2236_v19 = vrot.slane %v1220_v16, 7  ;;  %3918 = vmatprep.subr.bf16.mxu0 %v4232_v26  ;;  %v4234_v16 = vmov 0  }
 0x13f   : > { %4096 = vset.pattern.permute.xlu1 %v4234_v16  ;;  %4097 = vset.pattern.permute.xlu0 %v4234_v16 }
 0x140   : > { %v2171_v20 = vsel %vm1634_vm7, %v2169_v25, %v2170_v18  ;;  %v2238_v32 = vsel %vm1702_vm8, %v2236_v19, %v2237_v17  ;;  %v4157_v25 = vld [vmem:[%s4628_s17 + $0x10] ss:$8 sps:$4 sm:$0xff]  }
 0x141   : > { %3919 = vmatpush3.bf16.msra.mxu0 %v4137_v27  ;;  %v4178_v27 = vld [vmem:[%s4372_s20 + $0x60] ss:$8 sps:$4 sm:$0xff]  }
 0x142   : > { %3924 = vmatprep.subr.bf16.mxu0 %v4232_v26 }
 0x146   : > { %3859 = vmatmul.mubr.msk.bf16.vlgmr.msra.gmra.mrb[0].mxu1 %vm1228_vm1, %v1636_v35  ;;  %v4131_v35 = vld [vmem:[%s4333_s21 + $0x58] sm:$0xff]  }
 0x147   : > { %3863 = vmatpush3.bf16.msra.mxu1 %v4127_v3  ;;  %3864 = vmatprep.mubr.msk.bf16.mxu1 %vm1228_vm1, %v4501_v0  ;;  %v4135_v0 = vld [vmem:[%s4333_s21 + $0x78] sm:$0xff]  }
 0x148   : > { %3868 = vmatprep.subr.bf16.mxu1 %v4128_v38 }
 0x152   : > { %3865 = vmatmul.mubr.msk.bf16.vlgmr.msra.gmra.mrb[0].mxu1 %vm1228_vm1, %v1704_v57  ;;  %v4134_v57 = vld [vmem:[%s4333_s21 + $0x70] sm:$0xff]  }
 0x153   : > { %3869 = vmatpush3.bf16.msra.mxu1 %v4128_v38  ;;  %3870 = vmatprep.mubr.msk.bf16.mxu1 %vm1228_vm1, %v4488_v51  ;;  %v4132_v51 = vld [vmem:[%s4333_s21 + $0x60] sm:$0xff]   ;;  %s590_s21 = scalar_lea.vmem %s4782_s4, %s4793_s26 }
 0x154   : > { %3874 = vmatprep.subr.bf16.mxu1 %v4129_v48  ;;  %v3522_v5 = vld [vmem:[%s590_s21] ss:$0 sm:$0xff] }
 0x15e   : > { %3871 = vmatmul.mubr.msk.bf16.vlgmr.msra.gmra.mrb[0].mxu1 %vm1228_vm1, %v4508_v6 }
 0x15f   : > { %3875 = vmatpush3.bf16.msra.mxu1 %v4129_v48  ;;  %3876 = vmatprep.mubr.msk.bf16.mxu1 %vm1228_vm1, %v4519_v21 }
 0x160   : > { %3880 = vmatprep.subr.bf16.mxu1 %v4130_v30 }
 0x16a   : > { %3877 = vmatmul.mubr.msk.bf16.vlgmr.msra.gmra.mrb[0].mxu1 %vm1228_vm1, %v1835_v8 }
 0x16b   : > { %3881 = vmatpush3.bf16.msra.mxu1 %v4130_v30  ;;  %3882 = vmatprep.mubr.msk.bf16.mxu1 %vm1228_vm1, %v1903_v12 }
 0x16c   : > { %3886 = vmatprep.subr.bf16.mxu1 %v4131_v35 }
 0x176   : > { %3883 = vmatmul.mubr.msk.bf16.vlgmr.msra.gmra.mrb[0].mxu1 %vm1228_vm1, %v1902_v36 }
 0x177   : > { %3887 = vmatpush3.bf16.msra.mxu1 %v4131_v35  ;;  %3888 = vmatprep.mubr.msk.bf16.mxu1 %vm1228_vm1, %v1970_v45  ;;  %v4139_v45 = vld [vmem:[%s4351_s19 + $0x18] sm:$0xff]   ;;  %v4160_v35 = vld [vmem:[%s4372_s20] ss:$8 sps:$4 sm:$0xff]  }
 0x178   : > { %3892 = vmatprep.subr.bf16.mxu1 %v4132_v51 }
 0x182   : > { %3889 = vmatmul.mubr.msk.bf16.vlgmr.msra.gmra.mrb[0].mxu1 %vm1228_vm1, %v1969_v31 }
 0x183   : > { %3893 = vmatpush3.bf16.msra.mxu1 %v4132_v51  ;;  %3894 = vmatprep.mubr.msk.bf16.mxu1 %vm1228_vm1, %v2037_v10 }
 0x184   : > { %3898 = vmatprep.subr.bf16.mxu1 %v4133_v53 }
 0x18e   : > { %3895 = vmatmul.mubr.msk.bf16.vlgmr.msra.gmra.mrb[0].mxu1 %vm1228_vm1, %v2036_v59  ;;  %v4146_v59 = vld [vmem:[%s4351_s19 + $0x50] sm:$0xff]  }
 0x18f   : > { %3899 = vmatpush3.bf16.msra.mxu1 %v4133_v53  ;;  %3900 = vmatprep.mubr.msk.bf16.mxu1 %vm1228_vm1, %v2104_v11  ;;  %v4153_v11 = vld [vmem:[%s4351_s19 + $0x88] sm:$0xff]   ;;  %v4165_v53 = vld [vmem:[%s4372_s20 + $0x14] ss:$8 sps:$4 sm:$0xff]  }
 0x190   : > { %3904 = vmatprep.subr.bf16.mxu1 %v4134_v57 }
 0x19a   : > { %3901 = vmatmul.mubr.msk.bf16.vlgmr.msra.gmra.mrb[0].mxu1 %vm1228_vm1, %v2103_v55  ;;  %v4144_v55 = vld [vmem:[%s4351_s19 + $0x40] sm:$0xff]  }
 0x19b   : > { %3905 = vmatpush3.bf16.msra.mxu1 %v4134_v57  ;;  %3906 = vmatprep.mubr.msk.bf16.mxu1 %vm1228_vm1, %v2171_v20  ;;  %v4163_v57 = vld [vmem:[%s4372_s20 + $0x10] ss:$8 sps:$4 sm:$0xff]  }
 0x19c   : > { %3910 = vmatprep.subr.bf16.mxu1 %v4135_v0 }
 0x1a6   : > { %3907 = vmatmul.mubr.msk.bf16.vlgmr.msra.gmra.mrb[0].mxu1 %vm1228_vm1, %v2170_v18  ;;  %v3571_v18 = vld [vmem:[%s598_s18] ss:$0 sm:$0xff] }
 0x1a7   : > { %3911 = vmatpush3.bf16.msra.mxu1 %v4135_v0  ;;  %3912 = vmatprep.mubr.msk.bf16.mxu1 %vm1228_vm1, %v2238_v32  ;;  %v4168_v0 = vld [vmem:[%s4372_s20 + $0x24] ss:$8 sps:$4 sm:$0xff]  }
 0x1a8   : > { %2862 = vmatprep.subr.bf16.mxu1 %v4156_v29  ;;  %v4181_v29 = vld [vmem:[%s4372_s20 + $0x70] ss:$8 sps:$4 sm:$0xff]  }
 0x1b2   : > { %3913 = vmatmul.mubr.msk.bf16.vlgmr.msra.gmra.mrb[0].mxu1 %vm1228_vm1, %v2237_v17  ;;  %v4162_v17 = vld [vmem:[%s4372_s20 + $0x4] ss:$8 sps:$4 sm:$0xff]  }
 0x1b3   : > { %2863 = vmatpush1.bf16.msra.mxu1 %v4154_v28  ;;  %2894 = vmatprep.mubr.bf16.mxu1 %v4234_v16  ;;  %v4183_v28 = vld [vmem:[%s4372_s20 + $0x74] ss:$8 sps:$4 sm:$0xff]  }
 0x1b4   : > { %2864 = vmatprep.subr.bf16.mxu1 %v4159_v15 }
 0x1b7   : > { %2865 = vmatpush1.bf16.msra.mxu1 %v4157_v25 }
 0x1b8   : > { %3078 = vmatprep.subr.bf16.mxu1 %v4162_v17 }
 0x1d2   : > { %v3824_v6 = vpop.f32.mrb[36].mxu0 }
 0x1d3   : > { %v1291_v8 = vadd.f32 %v3824_v6, %v3522_v5  ;;  %v1269_v21 = vpop.f32.mrb[37].mxu0  ;;  %v4171_v6 = vld [vmem:[%s4372_s20 + $0x34] ss:$8 sps:$4 sm:$0xff]  }
 0x1d4   : > { %v3825_v22 = vpop.f32.mrb[38].mxu0  ;;  %v1289_v31 = vadd.f32 %v3522_v5, %v1269_v21  ;;  %v4174_v21 = vld [vmem:[%s4372_s20 + $0x44] ss:$8 sps:$4 sm:$0xff]  }
 0x1d5   : > { %v1272_v23 = vpop.f32.mrb[39].mxu0  ;;  %v4172_v22 = vld [vmem:[%s4372_s20 + $0x40] ss:$8 sps:$4 sm:$0xff]  }
 0x1d6   : > { %v1290_v37 = vadd.f32 %v3522_v5, %v1272_v23  ;;  %v4166_v5 = vld [vmem:[%s4372_s20 + $0x20] ss:$8 sps:$4 sm:$0xff]   ;;  %v4177_v23 = vld [vmem:[%s4372_s20 + $0x54] ss:$8 sps:$4 sm:$0xff]  }
 0x285   : > { %v3914_v33 = vpop.f32.mrb[0].mxu1 }
 0x286   : > { %v4632_v34 = vadd.f32 %v3914_v33, %v1291_v8  ;;  %v2285_v36 = vpop.f32.mrb[1].mxu1  ;;  %v4169_v8 = vld [vmem:[%s4372_s20 + $0x30] ss:$8 sps:$4 sm:$0xff]   ;;  %v4184_v33 = vld [vmem:[%s4372_s20 + $0x80] ss:$8 sps:$4 sm:$0xff]  }
 0x287   : > { %v3991_v39 = vadd.f32 %v2285_v36, %v1289_v31  ;;  %v3915_v40 = vpop.f32.mrb[2].mxu1  ;;  %v4186_v31 = vld [vmem:[%s4372_s20 + $0x84] ss:$8 sps:$4 sm:$0xff]   ;;  %v4187_v36 = vld [vmem:[%s4372_s20 + $0x90] ss:$8 sps:$4 sm:$0xff]  }
 0x288   : > { %v2288_v41 = vpop.f32.mrb[3].mxu1  ;;  %v2304_v13 = vmax.f32 %v4632_v34, 0.0  ;;  %v4189_v34 = vld [vmem:[%s4372_s20 + $0x94] ss:$8 sps:$4 sm:$0xff]  }
 0x289   : > { %v3993_v42 = vadd.f32 %v2288_v41, %v1290_v37  ;;  %v2302_v43 = vmax.f32 %v3991_v39, 0.0  ;;  %v4192_v37 = vld [vmem:[%s4372_s20 + $0xa4] ss:$8 sps:$4 sm:$0xff]   ;;  %v4190_v39 = vld [vmem:[%s4372_s20 + $0xa0] ss:$8 sps:$4 sm:$0xff]  }
 0x28a   : > { %v2306_v14 = vpack.c.bf16 %v2304_v13, %v2304_v13  ;;  %v4195_v40 = vld [vmem:[%s4372_s20 + $0xb4] ss:$8 sps:$4 sm:$0xff]   ;;  %v4193_v41 = vld [vmem:[%s4372_s20 + $0xb0] ss:$8 sps:$4 sm:$0xff]  }
 0x28b   : > { %v2303_v44 = vmax.f32 %v3993_v42, 0.0  ;;  %v4198_v42 = vld [vmem:[%s4372_s20 + $0xc4] ss:$8 sps:$4 sm:$0xff]  }
 0x28d   : > { %v4635_v12 = vpack.c.bf16 %v2303_v44, %v2302_v43  ;;  %v4196_v43 = vld [vmem:[%s4372_s20 + $0xc0] ss:$8 sps:$4 sm:$0xff]   ;;  %v4201_v44 = vld [vmem:[%s4372_s20 + $0xd4] ss:$8 sps:$4 sm:$0xff]  }
 0x28f   : > { %3921 = vmatmul.mubr.msk.bf16.vlgmr.msra.gmra.mrb[40].mxu0 %vm2319_vm10, %v4635_v12  ;;  %v2371_v49 = vrot.slane %v4635_v12, 1  ;;  %v2428_v52 = vrot.slane %v4635_v12, 2  ;;  %v2485_v56 = vrot.slane %v4635_v12, 3  ;;  %v2542_v60 = vrot.slane %v4635_v12, 4 }
 0x290   : > { %3925 = vmatpush3.bf16.msra.mxu0 %v4138_v9  ;;  %3928 = vmatprep.mubr.msk.bf16.mxu0 %vm4233_vm9, %v4232_v26  ;;  %v2599_v63 = vrot.slane %v4635_v12, 5  ;;  %v2656_v3 = vrot.slane %v4635_v12, 6  ;;  %v2713_v10 = vrot.slane %v4635_v12, 7  ;;  %v4199_v9 = vld [vmem:[%s4372_s20 + $0xd0] ss:$8 sps:$4 sm:$0xff]  }
 0x291   : > { %3926 = vmatprep.subr.bf16.mxu0 %v4232_v26  ;;  %v4204_v12 = vld [vmem:[%s4372_s20 + $0xe4] ss:$8 sps:$4 sm:$0xff]  }
 0x294   : > { %3927 = vmatpush3.bf16.msra.mxu0 %v4139_v45  ;;  %v4202_v45 = vld [vmem:[%s4372_s20 + $0xe0] ss:$8 sps:$4 sm:$0xff]  }
 0x295   : > { %3932 = vmatprep.subr.bf16.mxu0 %v4232_v26 }
 0x29b   : > { %3929 = vmatmul.mubr.msk.bf16.vlgmr.msra.gmra.mrb[40].mxu0 %vm2319_vm10, %v2371_v49  ;;  %v4205_v49 = vld [vmem:[%s4372_s20 + $0xf0] ss:$8 sps:$4 sm:$0xff]  }
 0x29c   : > { %3933 = vmatpush3.bf16.msra.mxu0 %v4140_v46  ;;  %3936 = vmatprep.mubr.msk.bf16.mxu0 %vm4233_vm9, %v4232_v26  ;;  %v4207_v46 = vld [vmem:[%s4372_s20 + $0xf4] ss:$8 sps:$4 sm:$0xff]  }
 0x29d   : > { %3934 = vmatprep.subr.bf16.mxu0 %v4232_v26 }
 0x2a0   : > { %3935 = vmatpush3.bf16.msra.mxu0 %v4141_v47  ;;  %v4208_v47 = vld [vmem:[%s4385_s15 + $0x40] sm:$0xff]  }
 0x2a1   : > { %3940 = vmatprep.subr.bf16.mxu0 %v4232_v26 }
 0x2a7   : > { %3937 = vmatmul.mubr.msk.bf16.vlgmr.msra.gmra.mrb[40].mxu0 %vm2319_vm10, %v2428_v52  ;;  %v4210_v52 = vld [vmem:[%s4385_s15 + $0x48] sm:$0xff]  }
 0x2a8   : > { %3941 = vmatpush3.bf16.msra.mxu0 %v4142_v50  ;;  %3944 = vmatprep.mubr.msk.bf16.mxu0 %vm4233_vm9, %v4232_v26  ;;  %v4209_v50 = vld [vmem:[%s4385_s15] sm:$0xff]  }
 0x2a9   : > { %3942 = vmatprep.subr.bf16.mxu0 %v4232_v26 }
 0x2ac   : > { %3943 = vmatpush3.bf16.msra.mxu0 %v4143_v54  ;;  %v4211_v54 = vld [vmem:[%s4385_s15 + $0x8] sm:$0xff]  }
 0x2ad   : > { %3948 = vmatprep.subr.bf16.mxu0 %v4232_v26 }
 0x2b3   : > { %3945 = vmatmul.mubr.msk.bf16.vlgmr.msra.gmra.mrb[40].mxu0 %vm2319_vm10, %v2485_v56  ;;  %v4213_v56 = vld [vmem:[%s4385_s15 + $0x10] sm:$0xff]  }
 0x2b4   : > { %3949 = vmatpush3.bf16.msra.mxu0 %v4144_v55  ;;  %3952 = vmatprep.mubr.msk.bf16.mxu0 %vm4233_vm9, %v4232_v26  ;;  %v4212_v55 = vld [vmem:[%s4385_s15 + $0x50] sm:$0xff]  }
 0x2b5   : > { %3950 = vmatprep.subr.bf16.mxu0 %v4232_v26 }
 0x2b8   : > { %3951 = vmatpush3.bf16.msra.mxu0 %v4145_v58  ;;  %v4214_v58 = vld [vmem:[%s4385_s15 + $0x58] sm:$0xff]  }
 0x2b9   : > { %3956 = vmatprep.subr.bf16.mxu0 %v4232_v26 }
 0x2bf   : > { %3953 = vmatmul.mubr.msk.bf16.vlgmr.msra.gmra.mrb[40].mxu0 %vm2319_vm10, %v2542_v60  ;;  %v4216_v60 = vld [vmem:[%s4385_s15 + $0x60] sm:$0xff]  }
 0x2c0   : > { %3957 = vmatpush3.bf16.msra.mxu0 %v4146_v59  ;;  %3960 = vmatprep.mubr.msk.bf16.mxu0 %vm4233_vm9, %v4232_v26  ;;  %v4215_v59 = vld [vmem:[%s4385_s15 + $0x18] sm:$0xff]  }
 0x2c1   : > { %3958 = vmatprep.subr.bf16.mxu0 %v4232_v26 }
 0x2c4   : > { %3959 = vmatpush3.bf16.msra.mxu0 %v4147_v61  ;;  %v4217_v61 = vld [vmem:[%s4385_s15 + $0x20] sm:$0xff]  }
 0x2c5   : > { %3964 = vmatprep.subr.bf16.mxu0 %v4232_v26 }
 0x2cb   : > { %3961 = vmatmul.mubr.msk.bf16.vlgmr.msra.gmra.mrb[40].mxu0 %vm2319_vm10, %v2599_v63  ;;  %v4219_v63 = vld [vmem:[%s4385_s15 + $0x28] sm:$0xff]  }
 0x2cc   : > { %3965 = vmatpush3.bf16.msra.mxu0 %v4148_v62  ;;  %3968 = vmatprep.mubr.msk.bf16.mxu0 %vm4233_vm9, %v4232_v26  ;;  %v4218_v62 = vld [vmem:[%s4385_s15 + $0x68] sm:$0xff]  }
 0x2cd   : > { %3966 = vmatprep.subr.bf16.mxu0 %v4232_v26 }
 0x2d0   : > { %3967 = vmatpush3.bf16.msra.mxu0 %v4149_v1  ;;  %v2829_v1 = vlaneseq }
 0x2d1   : > { %3972 = vmatprep.subr.bf16.mxu0 %v4232_v26 }
 0x2d7   : > { %3969 = vmatmul.mubr.msk.bf16.vlgmr.msra.gmra.mrb[40].mxu0 %vm2319_vm10, %v2656_v3 }
 0x2d8   : > { %3973 = vmatpush3.bf16.msra.mxu0 %v4150_v2  ;;  %3976 = vmatprep.mubr.msk.bf16.mxu0 %vm4233_vm9, %v4232_v26  ;;  %v2830_v2 = vshrl.u32 %v2829_v1, 7 }
 0x2d9   : > { %3974 = vmatprep.subr.bf16.mxu0 %v4232_v26 }
 0x2da   : > { %v2831_v3 = vsub.s32 0, %v2830_v2 }
 0x2dc   : > { %3975 = vmatpush3.bf16.msra.mxu0 %v4151_v4 }
 0x2dd   : > { %3980 = vmatprep.subr.bf16.mxu0 %v4232_v26 }
 0x2e3   : > { %3977 = vmatmul.mubr.msk.bf16.vlgmr.msra.gmra.mrb[40].mxu0 %vm2319_vm10, %v2713_v10 }
 0x2e4   : > { %3981 = vmatpush3.bf16.msra.mxu0 %v4152_v7  ;;  %3984 = vmatprep.mubr.msk.bf16.mxu0 %vm4233_vm9, %v4232_v26  ;;  %v2835_v7 = vsub.s32 1, %v2830_v2 }
 0x2e5   : > { %3982 = vmatprep.subr.bf16.mxu0 %v4232_v26  ;;  %v4180_v26 = vld [vmem:[%s4372_s20 + $0x64] ss:$8 sps:$4 sm:$0xff]   ;;  %s4753_s20 = sshll.u32 %s4793_s26, 1 }
 0x2e6   : > { %s607_s23 = scalar_lea.vmem %s4786_s8, %s4753_s20  ;;  %s616_s14 = scalar_lea.vmem %s4788_s10, %s4753_s20 }
 0x2e7   : > { %v749_v4 = vld [vmem:[%s607_s23] sm:$0x3]  ;;  %s628_s29 = scalar_lea.vmem %s4791_s13, %s4753_s20 }
 0x2e8   : > { %3983 = vmatpush3.bf16.msra.mxu0 %v4153_v11  ;;  %v2832_v10 = vrot.slane %v749_v4, %v2831_v3  ;;  %v2836_v11 = vrot.slane %v749_v4, %v2835_v7 }
 0x2e9   : > { %3754 = vmatprep.subr.bf16.mxu0 %v4208_v47 }
 0x2ef   : > { %3985 = vmatmul.mubr.msk.bf16.vlgmr.msra.gmra.mrb[40].mxu0 %vm2319_vm10, %v2306_v14 }
 0x2f0   : > { %3755 = vmatpush3.bf16.msra.mxu0 %v4209_v50 }
 0x2f1   : > { %3756 = vmatprep.subr.bf16.mxu0 %v4210_v52 }
 0x2f4   : > { %3757 = vmatpush3.bf16.msra.mxu0 %v4211_v54 }
 0x2f5   : > { %3758 = vmatprep.subr.bf16.mxu0 %v4212_v55 }
 0x2f8   : > { %3759 = vmatpush3.bf16.msra.mxu0 %v4213_v56 }
 0x2f9   : > { %3760 = vmatprep.subr.bf16.mxu0 %v4214_v58 }
 0x2fc   : > { %3761 = vmatpush3.bf16.msra.mxu0 %v4215_v59 }
 0x2fd   : > { %3762 = vmatprep.subr.bf16.mxu0 %v4216_v60 }
 0x300   : > { %3763 = vmatpush3.bf16.msra.mxu0 %v4217_v61 }
 0x301   : > { %3764 = vmatprep.subr.bf16.mxu0 %v4218_v62 }
 0x304   : > { %3765 = vmatpush3.bf16.msra.mxu0 %v4219_v63 }
 0x3c2   : > { %v2819_v19 = vpop.f32.mrb[40].mxu0 }
 0x3c3   : > { %v3994_v20 = vadd.f32 %v3571_v18, %v2819_v19  ;;  %v3986_v32 = vpop.f32.mrb[41].mxu0 }
 0x3c4   : > { %v2822_v38 = vpop.f32.mrb[42].mxu0 }
 0x3c5   : > { %v2826_v48 = vmax.f32 %v3994_v20, 0.0  ;;  %v3987_v30 = vpop.f32.mrb[43].mxu0  ;;  %v4220_v38 = vld [vmem:[%s4385_s15 + $0x70] sm:$0xff]  }
 0x3c6   : > { %3766 = vmatprep.subr.bf16.mxu0 %v4220_v38  ;;  %v4222_v30 = vld [vmem:[%s4385_s15 + $0x78] sm:$0xff]  }
 0x3c7   : > { %v2827_v51 = vpack.c.bf16 %v2826_v48, %v2826_v48  ;;  %v4221_v48 = vld [vmem:[%s4385_s15 + $0x30] sm:$0xff]  }
 0x3c8   : > { %3767 = vmatpush3.bf16.msra.mxu0 %v4221_v48 }
 0x3c9   : > { %3600 = vmatmul.mubr.msk.bf16.vlgmr.msra.gmra.mrb[4].mxu1 %vm2319_vm10, %v2827_v51  ;;  %3768 = vmatprep.subr.bf16.mxu0 %v4222_v30  ;;  %v782_v51 = vld [vmem:[%s616_s14] sm:$0x3] }
 0x3ca   : > { %3079 = vmatpush1.bf16.msra.mxu1 %v4160_v35  ;;  %v4223_v35 = vld [vmem:[%s4385_s15 + $0x38] sm:$0xff]  }
 0x3cb   : > { %3080 = vmatprep.subr.bf16.mxu1 %v4165_v53  ;;  %v2911_v53 = vrot.slane %v782_v51, %v2831_v3 }
 0x3cc   : > { %3769 = vmatpush3.bf16.msra.mxu0 %v4223_v35 }
 0x3ce   : > { %3081 = vmatpush1.bf16.msra.mxu1 %v4163_v57  ;;  %v2915_v57 = vrot.slane %v782_v51, %v2835_v7 }
 0x3cf   : > { %3082 = vmatprep.subr.bf16.mxu1 %v4168_v0 }
 0x3d2   : > { %3083 = vmatpush1.bf16.msra.mxu1 %v4166_v5 }
 0x3d3   : > { %3084 = vmatprep.subr.bf16.mxu1 %v4171_v6 }
 0x3d6   : > { %3085 = vmatpush1.bf16.msra.mxu1 %v4169_v8 }
 0x3d7   : > { %3086 = vmatprep.subr.bf16.mxu1 %v4174_v21 }
 0x3da   : > { %3087 = vmatpush1.bf16.msra.mxu1 %v4172_v22 }
 0x3db   : > { %3088 = vmatprep.subr.bf16.mxu1 %v4177_v23 }
 0x3de   : > { %3089 = vmatpush1.bf16.msra.mxu1 %v4175_v24 }
 0x3df   : > { %3090 = vmatprep.subr.bf16.mxu1 %v4180_v26 }
 0x3e2   : > { %3091 = vmatpush1.bf16.msra.mxu1 %v4178_v27 }
 0x3e3   : > { %3092 = vmatprep.subr.bf16.mxu1 %v4183_v28 }
 0x3e6   : > { %3093 = vmatpush1.bf16.msra.mxu1 %v4181_v29  ;;  %v3633_v29 = vld [vmem:[%s624_s24] ss:$0 sm:$0xff] }
 0x3e7   : > { %3094 = vmatprep.subr.bf16.mxu1 %v4186_v31 }
 0x3ea   : > { %3095 = vmatpush1.bf16.msra.mxu1 %v4184_v33 }
 0x3eb   : > { %3096 = vmatprep.subr.bf16.mxu1 %v4189_v34 }
 0x3ee   : > { %3097 = vmatpush1.bf16.msra.mxu1 %v4187_v36 }
 0x3ef   : > { %3098 = vmatprep.subr.bf16.mxu1 %v4192_v37 }
 0x3f2   : > { %3099 = vmatpush1.bf16.msra.mxu1 %v4190_v39 }
 0x3f3   : > { %3100 = vmatprep.subr.bf16.mxu1 %v4195_v40 }
 0x3f6   : > { %3101 = vmatpush1.bf16.msra.mxu1 %v4193_v41 }
 0x3f7   : > { %3102 = vmatprep.subr.bf16.mxu1 %v4198_v42 }
 0x3fa   : > { %3103 = vmatpush1.bf16.msra.mxu1 %v4196_v43 }
 0x3fb   : > { %3104 = vmatprep.subr.bf16.mxu1 %v4201_v44 }
 0x3fe   : > { %3105 = vmatpush1.bf16.msra.mxu1 %v4199_v9 }
 0x3ff   : > { %3106 = vmatprep.subr.bf16.mxu1 %v4204_v12 }
 0x402   : > { %3107 = vmatpush1.bf16.msra.mxu1 %v4202_v45 }
 0x403   : > { %3108 = vmatprep.subr.bf16.mxu1 %v4207_v46 }
 0x406   : > { %3109 = vmatpush1.bf16.msra.mxu1 %v4205_v49 }
 0x49c   : > { %v2896_v13 = vpop.f32.mrb[4].mxu1 }
 0x49d   : > { %v2897_v14 = vadd.f32 %v2896_v13, %v2832_v10  ;;  %v2898_v15 = vpop.f32.mrb[5].mxu1 }
 0x49e   : > { %v2899_v25 = vadd.f32 %v2898_v15, %v2836_v11  ;;  %v2900_v16 = vpop.f32.mrb[6].mxu1 }
 0x49f   : > { %v2903_v17 = vmax.f32 %v2897_v14, 0.0  ;;  %v2901_v18 = vpop.f32.mrb[7].mxu1 }
 0x4a0   : > { %v2904_v19 = vmax.f32 %v2899_v25, 0.0 }
 0x4a1   : > { %v2905_v32 = vpack.c.bf16 %v2903_v17, %v2903_v17 }
 0x4a2   : > { %v2906_v20 = vpack.c.bf16 %v2904_v19, %v2904_v19 }
 0x4a4   : > { %3110 = vmatprep.mubr.bf16.mxu1 %v2906_v20 }
 0x4a5   : > { %3111 = vmatmul.mubr.bf16.vlgmr.msra.gmra.mrb[8].mxu1 %v2905_v32 }
 0x578   : > { %v3112_v0 = vpop.f32.mrb[8].mxu1 }
 0x579   : > { %v3113_v5 = vadd.f32 %v3112_v0, %v2911_v53  ;;  %v3114_v6 = vpop.f32.mrb[9].mxu1 }
 0x57a   : > { %v3115_v8 = vadd.f32 %v3114_v6, %v2915_v57  ;;  %v3116_v21 = vpop.f32.mrb[10].mxu1 }
 0x57b   : > { %v3119_v22 = vmax.f32 %v3113_v5, 0.0  ;;  %v3117_v23 = vpop.f32.mrb[11].mxu1 }
 0x57c   : > { %v3120_v24 = vmax.f32 %v3115_v8, 0.0 }
 0x57d   : > { %v3121_v27 = vpack.c.bf16 %v3119_v22, %v3119_v22 }
 0x57e   : > { %v3122_v26 = vpack.c.bf16 %v3120_v24, %v3120_v24 }
 0x580   : > { %3257 = vmatprep.mubr.bf16.mxu0 %v3122_v26 }
 0x581   : > { %3258 = vmatmul.mubr.bf16.vlgmr.msra.gmra.mrb[44].mxu0 %v3121_v27 }
 0x654   : > { %v3770_v28 = vpop.f32.mrb[44].mxu0 }
 0x655   : > { %v3771_v31 = vpop.f32.mrb[45].mxu0 }
 0x656   : > { %v3772_v33 = vadd.f32 %v3771_v31, %v3770_v28  ;;  %v3773_v34 = vpop.f32.mrb[46].mxu0 }
 0x657   : > { %v3774_v36 = vpop.f32.mrb[47].mxu0 }
 0x658   : > { %v3260_v37 = vadd.f32 %v3772_v33, %v3633_v29 }
 0x65a   : > { %3267 = vperm.xlu1 %4096, %v3260_v37   ;;  %3271 = vrot.lane.b32.xlu0 %v3260_v37, %s4235_s27 }
 0x6cc   : > { %v3272_v39 = vpop.permute.xlu0 %3271 }
 0x6cd   : > { %v3275_v40 = vsel %vm3274_vm11, %v3272_v39, 0.0 }
 0x6ce   : > { %3276 = vadd.xlane.f32.xlu0 %v3275_v40 }
 0x6d9   : > { %v3268_v41 = vpop.permute.xlu1 %3267 }
 0x6da   : > { %v3270_v43 = vadd.f32 %v3268_v41, %v3260_v37 }
 0x75b   : > { %v3277_v42 = vpop.xlane.xlu0 %3276 }
 0x75c   : > { %v3279_v44 = vmul.f32 0.25, %v3277_v42 }
 0x75e   : > { %v3280_v9 = vsub.f32 %v3270_v43, %v3279_v44 }
 0x760   : > { %3282 = vrot.lane.b32.xlu1 %v3280_v9, %s4235_s27 }
 0x7d2   : > { %v3283_v12 = vpop.permute.xlu1 %3282 }
 0x7d3   : > { %3285 = vst.msk [vmem:[%s628_s29] sm:$0x3] %vm3274_vm11, %v3283_v12 }
 0x7d4 PF: > { %s23_s25 = sadd.s32 1, %s4230_s25  }
 0x7d5   : > { %p20_p4 = scmp.ge.s32.totalorder %s23_s25, 6  }
 0x7d7   :  { %22 = sbr.rel (!%p20_p4) target bundleno = 1 (0x1), region = 135 }

</bundles_post_ra>
